<compile_context>
chip_gen: v7x
topology: tpu7x:2x2x1
jax: 0.10.0
libtpu: 0.0.40
codegen_flags: <defaults>
</compile_context>

<pallas_src>
import functools

import jax
import jax.numpy as jnp
from jax import lax
from jax.experimental import pallas as pl
from jax.experimental.pallas import tpu as pltpu


def _fused_lstm_fc_kernel(num_layers, T, Bp, H, *refs):
    """Whole-model kernel: L stacked LSTM layers + final Linear, one invocation.

    refs (in order):
      x_ref:                    (T*Bp, D)   time-major input, batch padded to Bp
      per layer l in [0, L):    wih (D_in, 4H), whh (H, 4H), b (1, 4H)
                                gate order along 4H is  i | f | o | g
      fcw_ref: (H, O), fcb_ref: (1, O)
      out_ref: (Bp, O)
      seq_ref:  VMEM (T*Bp, H)  hidden sequence of the current layer
      proj_ref: VMEM (T*Bp, 4H) hoisted input projection of the current layer
    """
    x_ref = refs[0]
    idx = 1
    layers = []
    for _ in range(num_layers):
        layers.append((refs[idx], refs[idx + 1], refs[idx + 2]))
        idx += 3
    fcw_ref, fcb_ref = refs[idx], refs[idx + 1]
    out_ref = refs[idx + 2]
    seq_ref = refs[idx + 3]
    proj_ref = refs[idx + 4]

    h_last = None
    for l, (wih_ref, whh_ref, b_ref) in enumerate(layers):
        seq_in = x_ref[...] if l == 0 else seq_ref[...]

        # Hoisted, lane-dense input projection for every timestep at once:
        # (T*Bp, D_in) @ (D_in, 4H) + (1, 4H).   4H == 128 lanes for H == 32.
        proj_ref[...] = (
            jnp.dot(seq_in, wih_ref[...], preferred_element_type=jnp.float32)
            + b_ref[...]
        )

        whh = whh_ref[...]                    # (H, 4H), resident across the loop
        write_seq = l < num_layers - 1        # last layer only needs final h

        def step(t, carry, whh=whh, write_seq=write_seq):
            h, c = carry
            row = t * Bp                      # Bp is a multiple of 8 (aligned)
            gates = proj_ref[pl.ds(row, Bp), :] + jnp.dot(
                h, whh, preferred_element_type=jnp.float32)          # (Bp, 4H)
            sig = jax.nn.sigmoid(gates[:, :3 * H])    # i | f | o, one EUP pass
            i_g = sig[:, :H]
            f_g = sig[:, H:2 * H]
            o_g = sig[:, 2 * H:3 * H]
            g_g = jnp.tanh(gates[:, 3 * H:])
            c_new = f_g * c + i_g * g_g
            h_new = o_g * jnp.tanh(c_new)
            if write_seq:
                seq_ref[pl.ds(row, Bp), :] = h_new
            return h_new, c_new

        zeros = jnp.zeros((Bp, H), jnp.float32)
        h_last, _ = lax.fori_loop(0, T, step, (zeros, zeros), unroll=True)

    # Final Linear on the last timestep's hidden state only: out[:, -1, :] @ W + b.
    out_ref[...] = (
        jnp.dot(h_last, fcw_ref[...], preferred_element_type=jnp.float32)
        + fcb_ref[...]
    )


def _pack_gates(w):
    """(4, A, B) gate-major PyTorch order (i, f, g, o) -> (A, 4B) packed (i, f, o, g)."""
    return jnp.concatenate([w[0], w[1], w[3], w[2]], axis=-1)


@jax.jit
def lstm_model_forward(x, lstm_params, fc_w, fc_b):
    """x: (B, T, D) batch-first, like the PyTorch module. Returns (B, O)."""
    B, T, D = x.shape
    H = lstm_params[0][0].shape[-1]
    O = fc_w.shape[-1]
    L = len(lstm_params)
    Bp = ((B + 7) // 8) * 8                            # pad batch to 8-sublane granule

    xt = jnp.transpose(x, (1, 0, 2))                   # (T, B, D)  time-major
    xt = jnp.pad(xt, ((0, 0), (0, Bp - B), (0, 0)))    # (T, Bp, D)
    x_flat = xt.reshape(T * Bp, D).astype(jnp.float32)

    packed = []
    for (wih, whh, b) in lstm_params:
        packed += [_pack_gates(wih), _pack_gates(whh), _pack_gates(b)]

    kernel = functools.partial(_fused_lstm_fc_kernel, L, T, Bp, H)
    out = pl.pallas_call(
        kernel,
        out_shape=jax.ShapeDtypeStruct((Bp, O), jnp.float32),
        scratch_shapes=[
            pltpu.VMEM((T * Bp, H), jnp.float32),       # hidden sequence slab
            pltpu.VMEM((T * Bp, 4 * H), jnp.float32),   # hoisted projection slab
        ],
    )(x_flat, *packed, fc_w, fc_b)
    return out[:B]


def lstm_model_reference(x, lstm_params, fc_w, fc_b):
    """Pure-JAX reference with identical math (PyTorch gate order i, f, g, o)."""
    seq = x                                   # (B, T, D)
    for (wih, whh, b) in lstm_params:
        B, T, _ = seq.shape
        H = wih.shape[-1]
        h = jnp.zeros((B, H), jnp.float32)
        c = jnp.zeros((B, H), jnp.float32)
        outs = []
        for t in range(T):
            xt = seq[:, t, :]
            g = [xt @ wih[k] + h @ whh[k] + b[k] for k in range(4)]
            i_g = jax.nn.sigmoid(g[0])
            f_g = jax.nn.sigmoid(g[1])
            g_g = jnp.tanh(g[2])
            o_g = jax.nn.sigmoid(g[3])
            c = f_g * c + i_g * g_g
            h = o_g * jnp.tanh(c)
            outs.append(h)
        seq = jnp.stack(outs, axis=1)
    return seq[:, -1, :] @ fc_w + fc_b


def init_params(key, input_dim, hidden_dim, num_layers, output_dim):
    """Deterministic synthetic init (uniform +-1/sqrt(H), like PyTorch's scale)."""
    scale = 1.0 / jnp.sqrt(jnp.float32(hidden_dim))
    lstm_params = []
    d_in = input_dim
    for _ in range(num_layers):
        key, k1, k2, k3 = jax.random.split(key, 4)
        wih = jax.random.uniform(k1, (4, d_in, hidden_dim), jnp.float32, -scale, scale)
        whh = jax.random.uniform(k2, (4, hidden_dim, hidden_dim), jnp.float32, -scale, scale)
        # PyTorch has b_ih + b_hh; their sum is what enters the gates.
        b = jax.random.uniform(k3, (4, 1, hidden_dim), jnp.float32, -scale, scale)
        lstm_params.append((wih, whh, b))
        d_in = hidden_dim
    key, k4, k5 = jax.random.split(key, 3)
    fc_w = jax.random.uniform(k4, (hidden_dim, output_dim), jnp.float32, -scale, scale)
    fc_b = jax.random.uniform(k5, (1, output_dim), jnp.float32, -scale, scale)
    return lstm_params, fc_w, fc_b


if __name__ == "__main__":
    # Module hyper-params (small): timeseries_length (= LSTM input_size) = 16,
    # hidden = 32, 2 recurrent layers, output_dim = 4; batch = 2, seq = 8.
    B, T, D = 2, 8, 16
    H, L, O = 32, 2, 4

    key = jax.random.PRNGKey(0)
    key, kx = jax.random.split(key)
    x = jax.random.normal(kx, (B, T, D), jnp.float32)

    lstm_params, fc_w, fc_b = init_params(key, D, H, L, O)

    out = lstm_model_forward(x, lstm_params, fc_w, fc_b)
    out = jax.block_until_ready(out)

    ref = lstm_model_reference(x, lstm_params, fc_w, fc_b)
    assert out.shape == (B, O), out.shape
    assert jnp.allclose(out, ref, atol=1e-4, rtol=1e-4), (out, ref)

    print("KERNEL_OK")
</pallas_src>

<mosaic_0001>
module attributes {stable_mosaic.version = 11 : i64} {
  func.func @_fused_lstm_fc_kernel(%arg0: memref<64x16xf32, #tpu.memory_space<vmem>>, %arg1: memref<16x128xf32, #tpu.memory_space<vmem>>, %arg2: memref<32x128xf32, #tpu.memory_space<vmem>>, %arg3: memref<1x128xf32, #tpu.memory_space<vmem>>, %arg4: memref<32x128xf32, #tpu.memory_space<vmem>>, %arg5: memref<32x128xf32, #tpu.memory_space<vmem>>, %arg6: memref<1x128xf32, #tpu.memory_space<vmem>>, %arg7: memref<32x4xf32, #tpu.memory_space<vmem>>, %arg8: memref<1x4xf32, #tpu.memory_space<vmem>>, %arg9: memref<8x4xf32, #tpu.memory_space<vmem>>, %arg10: memref<64x32xf32, #tpu.memory_space<vmem>>, %arg11: memref<64x128xf32, #tpu.memory_space<vmem>>) attributes {dimension_semantics = [], scalar_prefetch = 0 : i64, scratch_operands = 2 : i64, tpu.core_type = #tpu.core_type<tc>} {
    %c0 = arith.constant 0 : index
    %c0_0 = arith.constant 0 : index
    %0 = vector.load %arg0[%c0, %c0_0] : memref<64x16xf32, #tpu.memory_space<vmem>>, vector<64x16xf32>
    %c0_1 = arith.constant 0 : index
    %c0_2 = arith.constant 0 : index
    %1 = vector.load %arg1[%c0_1, %c0_2] : memref<16x128xf32, #tpu.memory_space<vmem>>, vector<16x128xf32>
    %cst = arith.constant dense<0.000000e+00> : vector<64x128xf32>
    %2 = tpu.matmul %0, %1, %cst {dimension_numbers = #tpu.dot_dimension_numbers<[1], [0], [0], [1], [0, 0, 1, 1], [], []>} : vector<64x16xf32>, vector<16x128xf32>, vector<64x128xf32> -> vector<64x128xf32>
    %c0_3 = arith.constant 0 : index
    %c0_4 = arith.constant 0 : index
    %3 = vector.load %arg3[%c0_3, %c0_4] : memref<1x128xf32, #tpu.memory_space<vmem>>, vector<1x128xf32>
    %4 = vector.broadcast %3 : vector<1x128xf32> to vector<64x128xf32>
    %5 = arith.addf %2, %4 : vector<64x128xf32>
    %c0_5 = arith.constant 0 : index
    %c0_6 = arith.constant 0 : index
    %6 = vector.load %arg11[%c0_5, %c0_6] : memref<64x128xf32, #tpu.memory_space<vmem>>, vector<64x128xf32>
    tpu.vector_store %arg11[%c0_5, %c0_6], %5 {strides = array<i32>} : memref<64x128xf32, #tpu.memory_space<vmem>>, vector<64x128xf32>,
    %c0_7 = arith.constant 0 : index
    %c0_8 = arith.constant 0 : index
    %7 = vector.load %arg2[%c0_7, %c0_8] : memref<32x128xf32, #tpu.memory_space<vmem>>, vector<32x128xf32>
    %cst_9 = arith.constant 0.000000e+00 : f32
    %8 = vector.broadcast %cst_9 : f32 to vector<8x32xf32>
    %c0_i32 = arith.constant 0 : i32
    %c8_i32 = arith.constant 8 : i32
    %9 = arith.muli %c0_i32, %c8_i32 : i32
    %10 = arith.index_cast %9 : i32 to index
    %c0_10 = arith.constant 0 : index
    %11 = vector.load %arg11[%10, %c0_10] : memref<64x128xf32, #tpu.memory_space<vmem>>, vector<8x128xf32>
    %cst_11 = arith.constant dense<0.000000e+00> : vector<8x128xf32>
    %12 = tpu.matmul %8, %7, %cst_11 {dimension_numbers = #tpu.dot_dimension_numbers<[1], [0], [0], [1], [0, 0, 1, 1], [], []>} : vector<8x32xf32>, vector<32x128xf32>, vector<8x128xf32> -> vector<8x128xf32>
    %13 = arith.addf %11, %12 : vector<8x128xf32>
    %14 = vector.extract_strided_slice %13 {offsets = [0, 0], sizes = [8, 96], strides = [1, 1]} : vector<8x128xf32> to vector<8x96xf32>
    %15 = arith.negf %14 : vector<8x96xf32>
    %16 = math.exp %15 : vector<8x96xf32>
    %cst_12 = arith.constant 1.000000e+00 : f32
    %17 = vector.broadcast %cst_12 : f32 to vector<8x96xf32>
    %18 = arith.addf %17, %16 : vector<8x96xf32>
    %19 = arith.divf %17, %18 : vector<8x96xf32>
    %20 = vector.extract_strided_slice %19 {offsets = [0, 0], sizes = [8, 32], strides = [1, 1]} : vector<8x96xf32> to vector<8x32xf32>
    %21 = vector.extract_strided_slice %19 {offsets = [0, 32], sizes = [8, 32], strides = [1, 1]} : vector<8x96xf32> to vector<8x32xf32>
    %22 = vector.extract_strided_slice %19 {offsets = [0, 64], sizes = [8, 32], strides = [1, 1]} : vector<8x96xf32> to vector<8x32xf32>
    %23 = vector.extract_strided_slice %13 {offsets = [0, 96], sizes = [8, 32], strides = [1, 1]} : vector<8x128xf32> to vector<8x32xf32>
    %24 = math.tanh %23 : vector<8x32xf32>
    %25 = arith.mulf %21, %8 : vector<8x32xf32>
    %26 = arith.mulf %20, %24 : vector<8x32xf32>
    %27 = arith.addf %25, %26 : vector<8x32xf32>
    %28 = math.tanh %27 : vector<8x32xf32>
    %29 = arith.mulf %22, %28 : vector<8x32xf32>
    %30 = arith.index_cast %9 : i32 to index
    %c0_13 = arith.constant 0 : index
    %31 = vector.load %arg10[%30, %c0_13] : memref<64x32xf32, #tpu.memory_space<vmem>>, vector<8x32xf32>
    tpu.vector_store %arg10[%30, %c0_13], %29 {strides = array<i32>} : memref<64x32xf32, #tpu.memory_space<vmem>>, vector<8x32xf32>,
    %c1_i32 = arith.constant 1 : i32
    %c8_i32_14 = arith.constant 8 : i32
    %32 = arith.muli %c1_i32, %c8_i32_14 : i32
    %33 = arith.index_cast %32 : i32 to index
    %c0_15 = arith.constant 0 : index
    %34 = vector.load %arg11[%33, %c0_15] : memref<64x128xf32, #tpu.memory_space<vmem>>, vector<8x128xf32>
    %cst_16 = arith.constant dense<0.000000e+00> : vector<8x128xf32>
    %35 = tpu.matmul %29, %7, %cst_16 {dimension_numbers = #tpu.dot_dimension_numbers<[1], [0], [0], [1], [0, 0, 1, 1], [], []>} : vector<8x32xf32>, vector<32x128xf32>, vector<8x128xf32> -> vector<8x128xf32>
    %36 = arith.addf %34, %35 : vector<8x128xf32>
    %37 = vector.extract_strided_slice %36 {offsets = [0, 0], sizes = [8, 96], strides = [1, 1]} : vector<8x128xf32> to vector<8x96xf32>
    %38 = arith.negf %37 : vector<8x96xf32>
    %39 = math.exp %38 : vector<8x96xf32>
    %cst_17 = arith.constant 1.000000e+00 : f32
    %40 = vector.broadcast %cst_17 : f32 to vector<8x96xf32>
    %41 = arith.addf %40, %39 : vector<8x96xf32>
    %42 = arith.divf %40, %41 : vector<8x96xf32>
    %43 = vector.extract_strided_slice %42 {offsets = [0, 0], sizes = [8, 32], strides = [1, 1]} : vector<8x96xf32> to vector<8x32xf32>
    %44 = vector.extract_strided_slice %42 {offsets = [0, 32], sizes = [8, 32], strides = [1, 1]} : vector<8x96xf32> to vector<8x32xf32>
    %45 = vector.extract_strided_slice %42 {offsets = [0, 64], sizes = [8, 32], strides = [1, 1]} : vector<8x96xf32> to vector<8x32xf32>
    %46 = vector.extract_strided_slice %36 {offsets = [0, 96], sizes = [8, 32], strides = [1, 1]} : vector<8x128xf32> to vector<8x32xf32>
    %47 = math.tanh %46 : vector<8x32xf32>
    %48 = arith.mulf %44, %27 : vector<8x32xf32>
    %49 = arith.mulf %43, %47 : vector<8x32xf32>
    %50 = arith.addf %48, %49 : vector<8x32xf32>
    %51 = math.tanh %50 : vector<8x32xf32>
    %52 = arith.mulf %45, %51 : vector<8x32xf32>
    %53 = arith.index_cast %32 : i32 to index
    %c0_18 = arith.constant 0 : index
    %54 = vector.load %arg10[%53, %c0_18] : memref<64x32xf32, #tpu.memory_space<vmem>>, vector<8x32xf32>
    tpu.vector_store %arg10[%53, %c0_18], %52 {strides = array<i32>} : memref<64x32xf32, #tpu.memory_space<vmem>>, vector<8x32xf32>,
    %c2_i32 = arith.constant 2 : i32
    %c8_i32_19 = arith.constant 8 : i32
    %55 = arith.muli %c2_i32, %c8_i32_19 : i32
    %56 = arith.index_cast %55 : i32 to index
    %c0_20 = arith.constant 0 : index
    %57 = vector.load %arg11[%56, %c0_20] : memref<64x128xf32, #tpu.memory_space<vmem>>, vector<8x128xf32>
    %cst_21 = arith.constant dense<0.000000e+00> : vector<8x128xf32>
    %58 = tpu.matmul %52, %7, %cst_21 {dimension_numbers = #tpu.dot_dimension_numbers<[1], [0], [0], [1], [0, 0, 1, 1], [], []>} : vector<8x32xf32>, vector<32x128xf32>, vector<8x128xf32> -> vector<8x128xf32>
    %59 = arith.addf %57, %58 : vector<8x128xf32>
    %60 = vector.extract_strided_slice %59 {offsets = [0, 0], sizes = [8, 96], strides = [1, 1]} : vector<8x128xf32> to vector<8x96xf32>
    %61 = arith.negf %60 : vector<8x96xf32>
    %62 = math.exp %61 : vector<8x96xf32>
    %cst_22 = arith.constant 1.000000e+00 : f32
    %63 = vector.broadcast %cst_22 : f32 to vector<8x96xf32>
    %64 = arith.addf %63, %62 : vector<8x96xf32>
    %65 = arith.divf %63, %64 : vector<8x96xf32>
    %66 = vector.extract_strided_slice %65 {offsets = [0, 0], sizes = [8, 32], strides = [1, 1]} : vector<8x96xf32> to vector<8x32xf32>
    %67 = vector.extract_strided_slice %65 {offsets = [0, 32], sizes = [8, 32], strides = [1, 1]} : vector<8x96xf32> to vector<8x32xf32>
    %68 = vector.extract_strided_slice %65 {offsets = [0, 64], sizes = [8, 32], strides = [1, 1]} : vector<8x96xf32> to vector<8x32xf32>
    %69 = vector.extract_strided_slice %59 {offsets = [0, 96], sizes = [8, 32], strides = [1, 1]} : vector<8x128xf32> to vector<8x32xf32>
    %70 = math.tanh %69 : vector<8x32xf32>
    %71 = arith.mulf %67, %50 : vector<8x32xf32>
    %72 = arith.mulf %66, %70 : vector<8x32xf32>
    %73 = arith.addf %71, %72 : vector<8x32xf32>
    %74 = math.tanh %73 : vector<8x32xf32>
    %75 = arith.mulf %68, %74 : vector<8x32xf32>
    %76 = arith.index_cast %55 : i32 to index
    %c0_23 = arith.constant 0 : index
    %77 = vector.load %arg10[%76, %c0_23] : memref<64x32xf32, #tpu.memory_space<vmem>>, vector<8x32xf32>
    tpu.vector_store %arg10[%76, %c0_23], %75 {strides = array<i32>} : memref<64x32xf32, #tpu.memory_space<vmem>>, vector<8x32xf32>,
    %c3_i32 = arith.constant 3 : i32
    %c8_i32_24 = arith.constant 8 : i32
    %78 = arith.muli %c3_i32, %c8_i32_24 : i32
    %79 = arith.index_cast %78 : i32 to index
    %c0_25 = arith.constant 0 : index
    %80 = vector.load %arg11[%79, %c0_25] : memref<64x128xf32, #tpu.memory_space<vmem>>, vector<8x128xf32>
    %cst_26 = arith.constant dense<0.000000e+00> : vector<8x128xf32>
    %81 = tpu.matmul %75, %7, %cst_26 {dimension_numbers = #tpu.dot_dimension_numbers<[1], [0], [0], [1], [0, 0, 1, 1], [], []>} : vector<8x32xf32>, vector<32x128xf32>, vector<8x128xf32> -> vector<8x128xf32>
    %82 = arith.addf %80, %81 : vector<8x128xf32>
    %83 = vector.extract_strided_slice %82 {offsets = [0, 0], sizes = [8, 96], strides = [1, 1]} : vector<8x128xf32> to vector<8x96xf32>
    %84 = arith.negf %83 : vector<8x96xf32>
    %85 = math.exp %84 : vector<8x96xf32>
    %cst_27 = arith.constant 1.000000e+00 : f32
    %86 = vector.broadcast %cst_27 : f32 to vector<8x96xf32>
    %87 = arith.addf %86, %85 : vector<8x96xf32>
    %88 = arith.divf %86, %87 : vector<8x96xf32>
    %89 = vector.extract_strided_slice %88 {offsets = [0, 0], sizes = [8, 32], strides = [1, 1]} : vector<8x96xf32> to vector<8x32xf32>
    %90 = vector.extract_strided_slice %88 {offsets = [0, 32], sizes = [8, 32], strides = [1, 1]} : vector<8x96xf32> to vector<8x32xf32>
    %91 = vector.extract_strided_slice %88 {offsets = [0, 64], sizes = [8, 32], strides = [1, 1]} : vector<8x96xf32> to vector<8x32xf32>
    %92 = vector.extract_strided_slice %82 {offsets = [0, 96], sizes = [8, 32], strides = [1, 1]} : vector<8x128xf32> to vector<8x32xf32>
    %93 = math.tanh %92 : vector<8x32xf32>
    %94 = arith.mulf %90, %73 : vector<8x32xf32>
    %95 = arith.mulf %89, %93 : vector<8x32xf32>
    %96 = arith.addf %94, %95 : vector<8x32xf32>
    %97 = math.tanh %96 : vector<8x32xf32>
    %98 = arith.mulf %91, %97 : vector<8x32xf32>
    %99 = arith.index_cast %78 : i32 to index
    %c0_28 = arith.constant 0 : index
    %100 = vector.load %arg10[%99, %c0_28] : memref<64x32xf32, #tpu.memory_space<vmem>>, vector<8x32xf32>
    tpu.vector_store %arg10[%99, %c0_28], %98 {strides = array<i32>} : memref<64x32xf32, #tpu.memory_space<vmem>>, vector<8x32xf32>,
    %c4_i32 = arith.constant 4 : i32
    %c8_i32_29 = arith.constant 8 : i32
    %101 = arith.muli %c4_i32, %c8_i32_29 : i32
    %102 = arith.index_cast %101 : i32 to index
    %c0_30 = arith.constant 0 : index
    %103 = vector.load %arg11[%102, %c0_30] : memref<64x128xf32, #tpu.memory_space<vmem>>, vector<8x128xf32>
    %cst_31 = arith.constant dense<0.000000e+00> : vector<8x128xf32>
    %104 = tpu.matmul %98, %7, %cst_31 {dimension_numbers = #tpu.dot_dimension_numbers<[1], [0], [0], [1], [0, 0, 1, 1], [], []>} : vector<8x32xf32>, vector<32x128xf32>, vector<8x128xf32> -> vector<8x128xf32>
    %105 = arith.addf %103, %104 : vector<8x128xf32>
    %106 = vector.extract_strided_slice %105 {offsets = [0, 0], sizes = [8, 96], strides = [1, 1]} : vector<8x128xf32> to vector<8x96xf32>
    %107 = arith.negf %106 : vector<8x96xf32>
    %108 = math.exp %107 : vector<8x96xf32>
    %cst_32 = arith.constant 1.000000e+00 : f32
    %109 = vector.broadcast %cst_32 : f32 to vector<8x96xf32>
    %110 = arith.addf %109, %108 : vector<8x96xf32>
    %111 = arith.divf %109, %110 : vector<8x96xf32>
    %112 = vector.extract_strided_slice %111 {offsets = [0, 0], sizes = [8, 32], strides = [1, 1]} : vector<8x96xf32> to vector<8x32xf32>
    %113 = vector.extract_strided_slice %111 {offsets = [0, 32], sizes = [8, 32], strides = [1, 1]} : vector<8x96xf32> to vector<8x32xf32>
    %114 = vector.extract_strided_slice %111 {offsets = [0, 64], sizes = [8, 32], strides = [1, 1]} : vector<8x96xf32> to vector<8x32xf32>
    %115 = vector.extract_strided_slice %105 {offsets = [0, 96], sizes = [8, 32], strides = [1, 1]} : vector<8x128xf32> to vector<8x32xf32>
    %116 = math.tanh %115 : vector<8x32xf32>
    %117 = arith.mulf %113, %96 : vector<8x32xf32>
    %118 = arith.mulf %112, %116 : vector<8x32xf32>
    %119 = arith.addf %117, %118 : vector<8x32xf32>
    %120 = math.tanh %119 : vector<8x32xf32>
    %121 = arith.mulf %114, %120 : vector<8x32xf32>
    %122 = arith.index_cast %101 : i32 to index
    %c0_33 = arith.constant 0 : index
    %123 = vector.load %arg10[%122, %c0_33] : memref<64x32xf32, #tpu.memory_space<vmem>>, vector<8x32xf32>
    tpu.vector_store %arg10[%122, %c0_33], %121 {strides = array<i32>} : memref<64x32xf32, #tpu.memory_space<vmem>>, vector<8x32xf32>,
    %c5_i32 = arith.constant 5 : i32
    %c8_i32_34 = arith.constant 8 : i32
    %124 = arith.muli %c5_i32, %c8_i32_34 : i32
    %125 = arith.index_cast %124 : i32 to index
    %c0_35 = arith.constant 0 : index
    %126 = vector.load %arg11[%125, %c0_35] : memref<64x128xf32, #tpu.memory_space<vmem>>, vector<8x128xf32>
    %cst_36 = arith.constant dense<0.000000e+00> : vector<8x128xf32>
    %127 = tpu.matmul %121, %7, %cst_36 {dimension_numbers = #tpu.dot_dimension_numbers<[1], [0], [0], [1], [0, 0, 1, 1], [], []>} : vector<8x32xf32>, vector<32x128xf32>, vector<8x128xf32> -> vector<8x128xf32>
    %128 = arith.addf %126, %127 : vector<8x128xf32>
    %129 = vector.extract_strided_slice %128 {offsets = [0, 0], sizes = [8, 96], strides = [1, 1]} : vector<8x128xf32> to vector<8x96xf32>
    %130 = arith.negf %129 : vector<8x96xf32>
    %131 = math.exp %130 : vector<8x96xf32>
    %cst_37 = arith.constant 1.000000e+00 : f32
    %132 = vector.broadcast %cst_37 : f32 to vector<8x96xf32>
    %133 = arith.addf %132, %131 : vector<8x96xf32>
    %134 = arith.divf %132, %133 : vector<8x96xf32>
    %135 = vector.extract_strided_slice %134 {offsets = [0, 0], sizes = [8, 32], strides = [1, 1]} : vector<8x96xf32> to vector<8x32xf32>
    %136 = vector.extract_strided_slice %134 {offsets = [0, 32], sizes = [8, 32], strides = [1, 1]} : vector<8x96xf32> to vector<8x32xf32>
    %137 = vector.extract_strided_slice %134 {offsets = [0, 64], sizes = [8, 32], strides = [1, 1]} : vector<8x96xf32> to vector<8x32xf32>
    %138 = vector.extract_strided_slice %128 {offsets = [0, 96], sizes = [8, 32], strides = [1, 1]} : vector<8x128xf32> to vector<8x32xf32>
    %139 = math.tanh %138 : vector<8x32xf32>
    %140 = arith.mulf %136, %119 : vector<8x32xf32>
    %141 = arith.mulf %135, %139 : vector<8x32xf32>
    %142 = arith.addf %140, %141 : vector<8x32xf32>
    %143 = math.tanh %142 : vector<8x32xf32>
    %144 = arith.mulf %137, %143 : vector<8x32xf32>
    %145 = arith.index_cast %124 : i32 to index
    %c0_38 = arith.constant 0 : index
    %146 = vector.load %arg10[%145, %c0_38] : memref<64x32xf32, #tpu.memory_space<vmem>>, vector<8x32xf32>
    tpu.vector_store %arg10[%145, %c0_38], %144 {strides = array<i32>} : memref<64x32xf32, #tpu.memory_space<vmem>>, vector<8x32xf32>,
    %c6_i32 = arith.constant 6 : i32
    %c8_i32_39 = arith.constant 8 : i32
    %147 = arith.muli %c6_i32, %c8_i32_39 : i32
    %148 = arith.index_cast %147 : i32 to index
    %c0_40 = arith.constant 0 : index
    %149 = vector.load %arg11[%148, %c0_40] : memref<64x128xf32, #tpu.memory_space<vmem>>, vector<8x128xf32>
    %cst_41 = arith.constant dense<0.000000e+00> : vector<8x128xf32>
    %150 = tpu.matmul %144, %7, %cst_41 {dimension_numbers = #tpu.dot_dimension_numbers<[1], [0], [0], [1], [0, 0, 1, 1], [], []>} : vector<8x32xf32>, vector<32x128xf32>, vector<8x128xf32> -> vector<8x128xf32>
    %151 = arith.addf %149, %150 : vector<8x128xf32>
    %152 = vector.extract_strided_slice %151 {offsets = [0, 0], sizes = [8, 96], strides = [1, 1]} : vector<8x128xf32> to vector<8x96xf32>
    %153 = arith.negf %152 : vector<8x96xf32>
    %154 = math.exp %153 : vector<8x96xf32>
    %cst_42 = arith.constant 1.000000e+00 : f32
    %155 = vector.broadcast %cst_42 : f32 to vector<8x96xf32>
    %156 = arith.addf %155, %154 : vector<8x96xf32>
    %157 = arith.divf %155, %156 : vector<8x96xf32>
    %158 = vector.extract_strided_slice %157 {offsets = [0, 0], sizes = [8, 32], strides = [1, 1]} : vector<8x96xf32> to vector<8x32xf32>
    %159 = vector.extract_strided_slice %157 {offsets = [0, 32], sizes = [8, 32], strides = [1, 1]} : vector<8x96xf32> to vector<8x32xf32>
    %160 = vector.extract_strided_slice %157 {offsets = [0, 64], sizes = [8, 32], strides = [1, 1]} : vector<8x96xf32> to vector<8x32xf32>
    %161 = vector.extract_strided_slice %151 {offsets = [0, 96], sizes = [8, 32], strides = [1, 1]} : vector<8x128xf32> to vector<8x32xf32>
    %162 = math.tanh %161 : vector<8x32xf32>
    %163 = arith.mulf %159, %142 : vector<8x32xf32>
    %164 = arith.mulf %158, %162 : vector<8x32xf32>
    %165 = arith.addf %163, %164 : vector<8x32xf32>
    %166 = math.tanh %165 : vector<8x32xf32>
    %167 = arith.mulf %160, %166 : vector<8x32xf32>
    %168 = arith.index_cast %147 : i32 to index
    %c0_43 = arith.constant 0 : index
    %169 = vector.load %arg10[%168, %c0_43] : memref<64x32xf32, #tpu.memory_space<vmem>>, vector<8x32xf32>
    tpu.vector_store %arg10[%168, %c0_43], %167 {strides = array<i32>} : memref<64x32xf32, #tpu.memory_space<vmem>>, vector<8x32xf32>,
    %c7_i32 = arith.constant 7 : i32
    %c8_i32_44 = arith.constant 8 : i32
    %170 = arith.muli %c7_i32, %c8_i32_44 : i32
    %171 = arith.index_cast %170 : i32 to index
    %c0_45 = arith.constant 0 : index
    %172 = vector.load %arg11[%171, %c0_45] : memref<64x128xf32, #tpu.memory_space<vmem>>, vector<8x128xf32>
    %cst_46 = arith.constant dense<0.000000e+00> : vector<8x128xf32>
    %173 = tpu.matmul %167, %7, %cst_46 {dimension_numbers = #tpu.dot_dimension_numbers<[1], [0], [0], [1], [0, 0, 1, 1], [], []>} : vector<8x32xf32>, vector<32x128xf32>, vector<8x128xf32> -> vector<8x128xf32>
    %174 = arith.addf %172, %173 : vector<8x128xf32>
    %175 = vector.extract_strided_slice %174 {offsets = [0, 0], sizes = [8, 96], strides = [1, 1]} : vector<8x128xf32> to vector<8x96xf32>
    %176 = arith.negf %175 : vector<8x96xf32>
    %177 = math.exp %176 : vector<8x96xf32>
    %cst_47 = arith.constant 1.000000e+00 : f32
    %178 = vector.broadcast %cst_47 : f32 to vector<8x96xf32>
    %179 = arith.addf %178, %177 : vector<8x96xf32>
    %180 = arith.divf %178, %179 : vector<8x96xf32>
    %181 = vector.extract_strided_slice %180 {offsets = [0, 0], sizes = [8, 32], strides = [1, 1]} : vector<8x96xf32> to vector<8x32xf32>
    %182 = vector.extract_strided_slice %180 {offsets = [0, 32], sizes = [8, 32], strides = [1, 1]} : vector<8x96xf32> to vector<8x32xf32>
    %183 = vector.extract_strided_slice %180 {offsets = [0, 64], sizes = [8, 32], strides = [1, 1]} : vector<8x96xf32> to vector<8x32xf32>
    %184 = vector.extract_strided_slice %174 {offsets = [0, 96], sizes = [8, 32], strides = [1, 1]} : vector<8x128xf32> to vector<8x32xf32>
    %185 = math.tanh %184 : vector<8x32xf32>
    %186 = arith.mulf %182, %165 : vector<8x32xf32>
    %187 = arith.mulf %181, %185 : vector<8x32xf32>
    %188 = arith.addf %186, %187 : vector<8x32xf32>
    %189 = math.tanh %188 : vector<8x32xf32>
    %190 = arith.mulf %183, %189 : vector<8x32xf32>
    %191 = arith.index_cast %170 : i32 to index
    %c0_48 = arith.constant 0 : index
    %192 = vector.load %arg10[%191, %c0_48] : memref<64x32xf32, #tpu.memory_space<vmem>>, vector<8x32xf32>
    tpu.vector_store %arg10[%191, %c0_48], %190 {strides = array<i32>} : memref<64x32xf32, #tpu.memory_space<vmem>>, vector<8x32xf32>,
    %c8_i32_49 = arith.constant 8 : i32
    %c0_50 = arith.constant 0 : index
    %c0_51 = arith.constant 0 : index
    %193 = vector.load %arg10[%c0_50, %c0_51] : memref<64x32xf32, #tpu.memory_space<vmem>>, vector<64x32xf32>
    %c0_52 = arith.constant 0 : index
    %c0_53 = arith.constant 0 : index
    %194 = vector.load %arg4[%c0_52, %c0_53] : memref<32x128xf32, #tpu.memory_space<vmem>>, vector<32x128xf32>
    %cst_54 = arith.constant dense<0.000000e+00> : vector<64x128xf32>
    %195 = tpu.matmul %193, %194, %cst_54 {dimension_numbers = #tpu.dot_dimension_numbers<[1], [0], [0], [1], [0, 0, 1, 1], [], []>} : vector<64x32xf32>, vector<32x128xf32>, vector<64x128xf32> -> vector<64x128xf32>
    %c0_55 = arith.constant 0 : index
    %c0_56 = arith.constant 0 : index
    %196 = vector.load %arg6[%c0_55, %c0_56] : memref<1x128xf32, #tpu.memory_space<vmem>>, vector<1x128xf32>
    %197 = vector.broadcast %196 : vector<1x128xf32> to vector<64x128xf32>
    %198 = arith.addf %195, %197 : vector<64x128xf32>
    %c0_57 = arith.constant 0 : index
    %c0_58 = arith.constant 0 : index
    %199 = vector.load %arg11[%c0_57, %c0_58] : memref<64x128xf32, #tpu.memory_space<vmem>>, vector<64x128xf32>
    tpu.vector_store %arg11[%c0_57, %c0_58], %198 {strides = array<i32>} : memref<64x128xf32, #tpu.memory_space<vmem>>, vector<64x128xf32>,
    %c0_59 = arith.constant 0 : index
    %c0_60 = arith.constant 0 : index
    %200 = vector.load %arg5[%c0_59, %c0_60] : memref<32x128xf32, #tpu.memory_space<vmem>>, vector<32x128xf32>
    %cst_61 = arith.constant 0.000000e+00 : f32
    %201 = vector.broadcast %cst_61 : f32 to vector<8x32xf32>
    %c0_i32_62 = arith.constant 0 : i32
    %c8_i32_63 = arith.constant 8 : i32
    %202 = arith.muli %c0_i32_62, %c8_i32_63 : i32
    %203 = arith.index_cast %202 : i32 to index
    %c0_64 = arith.constant 0 : index
    %204 = vector.load %arg11[%203, %c0_64] : memref<64x128xf32, #tpu.memory_space<vmem>>, vector<8x128xf32>
    %cst_65 = arith.constant dense<0.000000e+00> : vector<8x128xf32>
    %205 = tpu.matmul %201, %200, %cst_65 {dimension_numbers = #tpu.dot_dimension_numbers<[1], [0], [0], [1], [0, 0, 1, 1], [], []>} : vector<8x32xf32>, vector<32x128xf32>, vector<8x128xf32> -> vector<8x128xf32>
    %206 = arith.addf %204, %205 : vector<8x128xf32>
    %207 = vector.extract_strided_slice %206 {offsets = [0, 0], sizes = [8, 96], strides = [1, 1]} : vector<8x128xf32> to vector<8x96xf32>
    %208 = arith.negf %207 : vector<8x96xf32>
    %209 = math.exp %208 : vector<8x96xf32>
    %cst_66 = arith.constant 1.000000e+00 : f32
    %210 = vector.broadcast %cst_66 : f32 to vector<8x96xf32>
    %211 = arith.addf %210, %209 : vector<8x96xf32>
    %212 = arith.divf %210, %211 : vector<8x96xf32>
    %213 = vector.extract_strided_slice %212 {offsets = [0, 0], sizes = [8, 32], strides = [1, 1]} : vector<8x96xf32> to vector<8x32xf32>
    %214 = vector.extract_strided_slice %212 {offsets = [0, 32], sizes = [8, 32], strides = [1, 1]} : vector<8x96xf32> to vector<8x32xf32>
    %215 = vector.extract_strided_slice %212 {offsets = [0, 64], sizes = [8, 32], strides = [1, 1]} : vector<8x96xf32> to vector<8x32xf32>
    %216 = vector.extract_strided_slice %206 {offsets = [0, 96], sizes = [8, 32], strides = [1, 1]} : vector<8x128xf32> to vector<8x32xf32>
    %217 = math.tanh %216 : vector<8x32xf32>
    %218 = arith.mulf %214, %201 : vector<8x32xf32>
    %219 = arith.mulf %213, %217 : vector<8x32xf32>
    %220 = arith.addf %218, %219 : vector<8x32xf32>
    %221 = math.tanh %220 : vector<8x32xf32>
    %222 = arith.mulf %215, %221 : vector<8x32xf32>
    %c1_i32_67 = arith.constant 1 : i32
    %c8_i32_68 = arith.constant 8 : i32
    %223 = arith.muli %c1_i32_67, %c8_i32_68 : i32
    %224 = arith.index_cast %223 : i32 to index
    %c0_69 = arith.constant 0 : index
    %225 = vector.load %arg11[%224, %c0_69] : memref<64x128xf32, #tpu.memory_space<vmem>>, vector<8x128xf32>
    %cst_70 = arith.constant dense<0.000000e+00> : vector<8x128xf32>
    %226 = tpu.matmul %222, %200, %cst_70 {dimension_numbers = #tpu.dot_dimension_numbers<[1], [0], [0], [1], [0, 0, 1, 1], [], []>} : vector<8x32xf32>, vector<32x128xf32>, vector<8x128xf32> -> vector<8x128xf32>
    %227 = arith.addf %225, %226 : vector<8x128xf32>
    %228 = vector.extract_strided_slice %227 {offsets = [0, 0], sizes = [8, 96], strides = [1, 1]} : vector<8x128xf32> to vector<8x96xf32>
    %229 = arith.negf %228 : vector<8x96xf32>
    %230 = math.exp %229 : vector<8x96xf32>
    %cst_71 = arith.constant 1.000000e+00 : f32
    %231 = vector.broadcast %cst_71 : f32 to vector<8x96xf32>
    %232 = arith.addf %231, %230 : vector<8x96xf32>
    %233 = arith.divf %231, %232 : vector<8x96xf32>
    %234 = vector.extract_strided_slice %233 {offsets = [0, 0], sizes = [8, 32], strides = [1, 1]} : vector<8x96xf32> to vector<8x32xf32>
    %235 = vector.extract_strided_slice %233 {offsets = [0, 32], sizes = [8, 32], strides = [1, 1]} : vector<8x96xf32> to vector<8x32xf32>
    %236 = vector.extract_strided_slice %233 {offsets = [0, 64], sizes = [8, 32], strides = [1, 1]} : vector<8x96xf32> to vector<8x32xf32>
    %237 = vector.extract_strided_slice %227 {offsets = [0, 96], sizes = [8, 32], strides = [1, 1]} : vector<8x128xf32> to vector<8x32xf32>
    %238 = math.tanh %237 : vector<8x32xf32>
    %239 = arith.mulf %235, %220 : vector<8x32xf32>
    %240 = arith.mulf %234, %238 : vector<8x32xf32>
    %241 = arith.addf %239, %240 : vector<8x32xf32>
    %242 = math.tanh %241 : vector<8x32xf32>
    %243 = arith.mulf %236, %242 : vector<8x32xf32>
    %c2_i32_72 = arith.constant 2 : i32
    %c8_i32_73 = arith.constant 8 : i32
    %244 = arith.muli %c2_i32_72, %c8_i32_73 : i32
    %245 = arith.index_cast %244 : i32 to index
    %c0_74 = arith.constant 0 : index
    %246 = vector.load %arg11[%245, %c0_74] : memref<64x128xf32, #tpu.memory_space<vmem>>, vector<8x128xf32>
    %cst_75 = arith.constant dense<0.000000e+00> : vector<8x128xf32>
    %247 = tpu.matmul %243, %200, %cst_75 {dimension_numbers = #tpu.dot_dimension_numbers<[1], [0], [0], [1], [0, 0, 1, 1], [], []>} : vector<8x32xf32>, vector<32x128xf32>, vector<8x128xf32> -> vector<8x128xf32>
    %248 = arith.addf %246, %247 : vector<8x128xf32>
    %249 = vector.extract_strided_slice %248 {offsets = [0, 0], sizes = [8, 96], strides = [1, 1]} : vector<8x128xf32> to vector<8x96xf32>
    %250 = arith.negf %249 : vector<8x96xf32>
    %251 = math.exp %250 : vector<8x96xf32>
    %cst_76 = arith.constant 1.000000e+00 : f32
    %252 = vector.broadcast %cst_76 : f32 to vector<8x96xf32>
    %253 = arith.addf %252, %251 : vector<8x96xf32>
    %254 = arith.divf %252, %253 : vector<8x96xf32>
    %255 = vector.extract_strided_slice %254 {offsets = [0, 0], sizes = [8, 32], strides = [1, 1]} : vector<8x96xf32> to vector<8x32xf32>
    %256 = vector.extract_strided_slice %254 {offsets = [0, 32], sizes = [8, 32], strides = [1, 1]} : vector<8x96xf32> to vector<8x32xf32>
    %257 = vector.extract_strided_slice %254 {offsets = [0, 64], sizes = [8, 32], strides = [1, 1]} : vector<8x96xf32> to vector<8x32xf32>
    %258 = vector.extract_strided_slice %248 {offsets = [0, 96], sizes = [8, 32], strides = [1, 1]} : vector<8x128xf32> to vector<8x32xf32>
    %259 = math.tanh %258 : vector<8x32xf32>
    %260 = arith.mulf %256, %241 : vector<8x32xf32>
    %261 = arith.mulf %255, %259 : vector<8x32xf32>
    %262 = arith.addf %260, %261 : vector<8x32xf32>
    %263 = math.tanh %262 : vector<8x32xf32>
    %264 = arith.mulf %257, %263 : vector<8x32xf32>
    %c3_i32_77 = arith.constant 3 : i32
    %c8_i32_78 = arith.constant 8 : i32
    %265 = arith.muli %c3_i32_77, %c8_i32_78 : i32
    %266 = arith.index_cast %265 : i32 to index
    %c0_79 = arith.constant 0 : index
    %267 = vector.load %arg11[%266, %c0_79] : memref<64x128xf32, #tpu.memory_space<vmem>>, vector<8x128xf32>
    %cst_80 = arith.constant dense<0.000000e+00> : vector<8x128xf32>
    %268 = tpu.matmul %264, %200, %cst_80 {dimension_numbers = #tpu.dot_dimension_numbers<[1], [0], [0], [1], [0, 0, 1, 1], [], []>} : vector<8x32xf32>, vector<32x128xf32>, vector<8x128xf32> -> vector<8x128xf32>
    %269 = arith.addf %267, %268 : vector<8x128xf32>
    %270 = vector.extract_strided_slice %269 {offsets = [0, 0], sizes = [8, 96], strides = [1, 1]} : vector<8x128xf32> to vector<8x96xf32>
    %271 = arith.negf %270 : vector<8x96xf32>
    %272 = math.exp %271 : vector<8x96xf32>
    %cst_81 = arith.constant 1.000000e+00 : f32
    %273 = vector.broadcast %cst_81 : f32 to vector<8x96xf32>
    %274 = arith.addf %273, %272 : vector<8x96xf32>
    %275 = arith.divf %273, %274 : vector<8x96xf32>
    %276 = vector.extract_strided_slice %275 {offsets = [0, 0], sizes = [8, 32], strides = [1, 1]} : vector<8x96xf32> to vector<8x32xf32>
    %277 = vector.extract_strided_slice %275 {offsets = [0, 32], sizes = [8, 32], strides = [1, 1]} : vector<8x96xf32> to vector<8x32xf32>
    %278 = vector.extract_strided_slice %275 {offsets = [0, 64], sizes = [8, 32], strides = [1, 1]} : vector<8x96xf32> to vector<8x32xf32>
    %279 = vector.extract_strided_slice %269 {offsets = [0, 96], sizes = [8, 32], strides = [1, 1]} : vector<8x128xf32> to vector<8x32xf32>
    %280 = math.tanh %279 : vector<8x32xf32>
    %281 = arith.mulf %277, %262 : vector<8x32xf32>
    %282 = arith.mulf %276, %280 : vector<8x32xf32>
    %283 = arith.addf %281, %282 : vector<8x32xf32>
    %284 = math.tanh %283 : vector<8x32xf32>
    %285 = arith.mulf %278, %284 : vector<8x32xf32>
    %c4_i32_82 = arith.constant 4 : i32
    %c8_i32_83 = arith.constant 8 : i32
    %286 = arith.muli %c4_i32_82, %c8_i32_83 : i32
    %287 = arith.index_cast %286 : i32 to index
    %c0_84 = arith.constant 0 : index
    %288 = vector.load %arg11[%287, %c0_84] : memref<64x128xf32, #tpu.memory_space<vmem>>, vector<8x128xf32>
    %cst_85 = arith.constant dense<0.000000e+00> : vector<8x128xf32>
    %289 = tpu.matmul %285, %200, %cst_85 {dimension_numbers = #tpu.dot_dimension_numbers<[1], [0], [0], [1], [0, 0, 1, 1], [], []>} : vector<8x32xf32>, vector<32x128xf32>, vector<8x128xf32> -> vector<8x128xf32>
    %290 = arith.addf %288, %289 : vector<8x128xf32>
    %291 = vector.extract_strided_slice %290 {offsets = [0, 0], sizes = [8, 96], strides = [1, 1]} : vector<8x128xf32> to vector<8x96xf32>
    %292 = arith.negf %291 : vector<8x96xf32>
    %293 = math.exp %292 : vector<8x96xf32>
    %cst_86 = arith.constant 1.000000e+00 : f32
    %294 = vector.broadcast %cst_86 : f32 to vector<8x96xf32>
    %295 = arith.addf %294, %293 : vector<8x96xf32>
    %296 = arith.divf %294, %295 : vector<8x96xf32>
    %297 = vector.extract_strided_slice %296 {offsets = [0, 0], sizes = [8, 32], strides = [1, 1]} : vector<8x96xf32> to vector<8x32xf32>
    %298 = vector.extract_strided_slice %296 {offsets = [0, 32], sizes = [8, 32], strides = [1, 1]} : vector<8x96xf32> to vector<8x32xf32>
    %299 = vector.extract_strided_slice %296 {offsets = [0, 64], sizes = [8, 32], strides = [1, 1]} : vector<8x96xf32> to vector<8x32xf32>
    %300 = vector.extract_strided_slice %290 {offsets = [0, 96], sizes = [8, 32], strides = [1, 1]} : vector<8x128xf32> to vector<8x32xf32>
    %301 = math.tanh %300 : vector<8x32xf32>
    %302 = arith.mulf %298, %283 : vector<8x32xf32>
    %303 = arith.mulf %297, %301 : vector<8x32xf32>
    %304 = arith.addf %302, %303 : vector<8x32xf32>
    %305 = math.tanh %304 : vector<8x32xf32>
    %306 = arith.mulf %299, %305 : vector<8x32xf32>
    %c5_i32_87 = arith.constant 5 : i32
    %c8_i32_88 = arith.constant 8 : i32
    %307 = arith.muli %c5_i32_87, %c8_i32_88 : i32
    %308 = arith.index_cast %307 : i32 to index
    %c0_89 = arith.constant 0 : index
    %309 = vector.load %arg11[%308, %c0_89] : memref<64x128xf32, #tpu.memory_space<vmem>>, vector<8x128xf32>
    %cst_90 = arith.constant dense<0.000000e+00> : vector<8x128xf32>
    %310 = tpu.matmul %306, %200, %cst_90 {dimension_numbers = #tpu.dot_dimension_numbers<[1], [0], [0], [1], [0, 0, 1, 1], [], []>} : vector<8x32xf32>, vector<32x128xf32>, vector<8x128xf32> -> vector<8x128xf32>
    %311 = arith.addf %309, %310 : vector<8x128xf32>
    %312 = vector.extract_strided_slice %311 {offsets = [0, 0], sizes = [8, 96], strides = [1, 1]} : vector<8x128xf32> to vector<8x96xf32>
    %313 = arith.negf %312 : vector<8x96xf32>
    %314 = math.exp %313 : vector<8x96xf32>
    %cst_91 = arith.constant 1.000000e+00 : f32
    %315 = vector.broadcast %cst_91 : f32 to vector<8x96xf32>
    %316 = arith.addf %315, %314 : vector<8x96xf32>
    %317 = arith.divf %315, %316 : vector<8x96xf32>
    %318 = vector.extract_strided_slice %317 {offsets = [0, 0], sizes = [8, 32], strides = [1, 1]} : vector<8x96xf32> to vector<8x32xf32>
    %319 = vector.extract_strided_slice %317 {offsets = [0, 32], sizes = [8, 32], strides = [1, 1]} : vector<8x96xf32> to vector<8x32xf32>
    %320 = vector.extract_strided_slice %317 {offsets = [0, 64], sizes = [8, 32], strides = [1, 1]} : vector<8x96xf32> to vector<8x32xf32>
    %321 = vector.extract_strided_slice %311 {offsets = [0, 96], sizes = [8, 32], strides = [1, 1]} : vector<8x128xf32> to vector<8x32xf32>
    %322 = math.tanh %321 : vector<8x32xf32>
    %323 = arith.mulf %319, %304 : vector<8x32xf32>
    %324 = arith.mulf %318, %322 : vector<8x32xf32>
    %325 = arith.addf %323, %324 : vector<8x32xf32>
    %326 = math.tanh %325 : vector<8x32xf32>
    %327 = arith.mulf %320, %326 : vector<8x32xf32>
    %c6_i32_92 = arith.constant 6 : i32
    %c8_i32_93 = arith.constant 8 : i32
    %328 = arith.muli %c6_i32_92, %c8_i32_93 : i32
    %329 = arith.index_cast %328 : i32 to index
    %c0_94 = arith.constant 0 : index
    %330 = vector.load %arg11[%329, %c0_94] : memref<64x128xf32, #tpu.memory_space<vmem>>, vector<8x128xf32>
    %cst_95 = arith.constant dense<0.000000e+00> : vector<8x128xf32>
    %331 = tpu.matmul %327, %200, %cst_95 {dimension_numbers = #tpu.dot_dimension_numbers<[1], [0], [0], [1], [0, 0, 1, 1], [], []>} : vector<8x32xf32>, vector<32x128xf32>, vector<8x128xf32> -> vector<8x128xf32>
    %332 = arith.addf %330, %331 : vector<8x128xf32>
    %333 = vector.extract_strided_slice %332 {offsets = [0, 0], sizes = [8, 96], strides = [1, 1]} : vector<8x128xf32> to vector<8x96xf32>
    %334 = arith.negf %333 : vector<8x96xf32>
    %335 = math.exp %334 : vector<8x96xf32>
    %cst_96 = arith.constant 1.000000e+00 : f32
    %336 = vector.broadcast %cst_96 : f32 to vector<8x96xf32>
    %337 = arith.addf %336, %335 : vector<8x96xf32>
    %338 = arith.divf %336, %337 : vector<8x96xf32>
    %339 = vector.extract_strided_slice %338 {offsets = [0, 0], sizes = [8, 32], strides = [1, 1]} : vector<8x96xf32> to vector<8x32xf32>
    %340 = vector.extract_strided_slice %338 {offsets = [0, 32], sizes = [8, 32], strides = [1, 1]} : vector<8x96xf32> to vector<8x32xf32>
    %341 = vector.extract_strided_slice %338 {offsets = [0, 64], sizes = [8, 32], strides = [1, 1]} : vector<8x96xf32> to vector<8x32xf32>
    %342 = vector.extract_strided_slice %332 {offsets = [0, 96], sizes = [8, 32], strides = [1, 1]} : vector<8x128xf32> to vector<8x32xf32>
    %343 = math.tanh %342 : vector<8x32xf32>
    %344 = arith.mulf %340, %325 : vector<8x32xf32>
    %345 = arith.mulf %339, %343 : vector<8x32xf32>
    %346 = arith.addf %344, %345 : vector<8x32xf32>
    %347 = math.tanh %346 : vector<8x32xf32>
    %348 = arith.mulf %341, %347 : vector<8x32xf32>
    %c7_i32_97 = arith.constant 7 : i32
    %c8_i32_98 = arith.constant 8 : i32
    %349 = arith.muli %c7_i32_97, %c8_i32_98 : i32
    %350 = arith.index_cast %349 : i32 to index
    %c0_99 = arith.constant 0 : index
    %351 = vector.load %arg11[%350, %c0_99] : memref<64x128xf32, #tpu.memory_space<vmem>>, vector<8x128xf32>
    %cst_100 = arith.constant dense<0.000000e+00> : vector<8x128xf32>
    %352 = tpu.matmul %348, %200, %cst_100 {dimension_numbers = #tpu.dot_dimension_numbers<[1], [0], [0], [1], [0, 0, 1, 1], [], []>} : vector<8x32xf32>, vector<32x128xf32>, vector<8x128xf32> -> vector<8x128xf32>
    %353 = arith.addf %351, %352 : vector<8x128xf32>
    %354 = vector.extract_strided_slice %353 {offsets = [0, 0], sizes = [8, 96], strides = [1, 1]} : vector<8x128xf32> to vector<8x96xf32>
    %355 = arith.negf %354 : vector<8x96xf32>
    %356 = math.exp %355 : vector<8x96xf32>
    %cst_101 = arith.constant 1.000000e+00 : f32
    %357 = vector.broadcast %cst_101 : f32 to vector<8x96xf32>
    %358 = arith.addf %357, %356 : vector<8x96xf32>
    %359 = arith.divf %357, %358 : vector<8x96xf32>
    %360 = vector.extract_strided_slice %359 {offsets = [0, 0], sizes = [8, 32], strides = [1, 1]} : vector<8x96xf32> to vector<8x32xf32>
    %361 = vector.extract_strided_slice %359 {offsets = [0, 32], sizes = [8, 32], strides = [1, 1]} : vector<8x96xf32> to vector<8x32xf32>
    %362 = vector.extract_strided_slice %359 {offsets = [0, 64], sizes = [8, 32], strides = [1, 1]} : vector<8x96xf32> to vector<8x32xf32>
    %363 = vector.extract_strided_slice %353 {offsets = [0, 96], sizes = [8, 32], strides = [1, 1]} : vector<8x128xf32> to vector<8x32xf32>
    %364 = math.tanh %363 : vector<8x32xf32>
    %365 = arith.mulf %361, %346 : vector<8x32xf32>
    %366 = arith.mulf %360, %364 : vector<8x32xf32>
    %367 = arith.addf %365, %366 : vector<8x32xf32>
    %368 = math.tanh %367 : vector<8x32xf32>
    %369 = arith.mulf %362, %368 : vector<8x32xf32>
    %c8_i32_102 = arith.constant 8 : i32
    %c0_103 = arith.constant 0 : index
    %c0_104 = arith.constant 0 : index
    %370 = vector.load %arg7[%c0_103, %c0_104] : memref<32x4xf32, #tpu.memory_space<vmem>>, vector<32x4xf32>
    %cst_105 = arith.constant dense<0.000000e+00> : vector<8x4xf32>
    %371 = tpu.matmul %369, %370, %cst_105 {dimension_numbers = #tpu.dot_dimension_numbers<[1], [0], [0], [1], [0, 0, 1, 1], [], []>} : vector<8x32xf32>, vector<32x4xf32>, vector<8x4xf32> -> vector<8x4xf32>
    %c0_106 = arith.constant 0 : index
    %c0_107 = arith.constant 0 : index
    %372 = vector.load %arg8[%c0_106, %c0_107] : memref<1x4xf32, #tpu.memory_space<vmem>>, vector<1x4xf32>
    %373 = vector.broadcast %372 : vector<1x4xf32> to vector<8x4xf32>
    %374 = arith.addf %371, %373 : vector<8x4xf32>
    %c0_108 = arith.constant 0 : index
    %c0_109 = arith.constant 0 : index
    %375 = vector.load %arg9[%c0_108, %c0_109] : memref<8x4xf32, #tpu.memory_space<vmem>>, vector<8x4xf32>
    tpu.vector_store %arg9[%c0_108, %c0_109], %374 {strides = array<i32>} : memref<8x4xf32, #tpu.memory_space<vmem>>, vector<8x4xf32>,
    return
  }
}

</mosaic_0001>

<bundles_post_ra>
// kernel: lstm_model_forward.1
= control target key start
LH: loop header
LB: loop body
LE: loop exit
PB: predicated region body
PF: predicated region fallthrough
CT: control target
= control target key end

     0   :  { %vm49_vm0 = vcmask 130048   ;;  %v2699_v0 = vmov 0.0|0.0   ;;  %vm2700_vm1 = vmmov 0   ;;  %v2701_v4 = vmov 0.0   ;;  %s2702_s25 = smov 32   ;;  %s3114_s1 = inlined_call_operand.vmem [shape: f32[16,128], index: 1, kind: input, shape index: {}]   ;;  %s3115_s2 = inlined_call_operand.vmem [shape: f32[32,128], index: 2, kind: input, shape index: {}]   ;;  %s3116_s0 = inlined_call_operand.vmem [shape: f32[64,16], index: 0, kind: input, shape index: {}]   ;;  %s3117_s3 = inlined_call_operand.vmem [shape: f32[1,128], index: 3, kind: input, shape index: {}]   ;;  %s3118_s4 = inlined_call_operand.vmem [shape: f32[32,128], index: 4, kind: input, shape index: {}]   ;;  %s3119_s5 = inlined_call_operand.vmem [shape: f32[32,128], index: 5, kind: input, shape index: {}]   ;;  %s3120_s6 = inlined_call_operand.vmem [shape: f32[1,128], index: 6, kind: input, shape index: {}]   ;;  %s3121_s7 = inlined_call_operand.vmem [shape: f32[32,4], index: 7, kind: input, shape index: {}]   ;;  %s3122_s8 = inlined_call_operand.vmem [shape: f32[1,4], index: 8, kind: input, shape index: {}]   ;;  %s3123_s9 = inlined_call_operand.vmem [shape: f32[8,4], index: 9, kind: output, shape index: {}]  }
   0x1   :  { %2456 = vmatprep.subr.bf16.mxu1 %v2699_v0  ;;  %v40_v1 = vld [vmem:[%s3114_s1] sm:$0xff]  ;;  %v41_v2 = vld [vmem:[%s3114_s1 + $0x8] sm:$0xff]  ;;  %2253 = vmatprep.mubr.msk.f32.mxu1 %vm2700_vm1, %v2701_v4  ;;  %v189_v9 = vld [vmem:[%s3115_s2 + $0x10] sm:$0xff]  ;;  %vm192_vm2 = vcmask 261120   ;;  %vm2066_vm3 = vcmask 31744  }
   0x2   :  { %v187_v3 = vld [vmem:[%s3115_s2] sm:$0xff]  ;;  %v2452_v5 = vpack.c.bf16 %v41_v2, %v40_v1  ;;  %v188_v6 = vld [vmem:[%s3115_s2 + $0x8] sm:$0xff]  ;;  %v190_v10 = vld [vmem:[%s3115_s2 + $0x18] sm:$0xff] }
   0x3   :  { %v32_v7 = vld [vmem:[%s3116_s0] sm:$0xff]  ;;  %v2772_v8 = vpack.c.bf16 %v188_v6, %v187_v3  ;;  %v33_v11 = vld [vmem:[%s3116_s0 + $0x8] sm:$0xff]  ;;  %v2785_v12 = vpack.c.bf16 %v190_v10, %v189_v9  ;;  %v34_v48 = vld [vmem:[%s3116_s0 + $0x10] sm:$0xff] }
   0x4   :  { %2233 = vmatprep.mubr.msk.f32.mxu0 %vm49_vm0, %v32_v7  ;;  %2453 = vmatprep.subr.bf16.mxu0 %v2452_v5  ;;  %v2806_v13 = vld [vmem:[%s3117_s3] ss:$0 sm:$0xff]  ;;  %s2703_s3 = smov 64   ;;  %v35_v49 = vld [vmem:[%s3116_s0 + $0x18] sm:$0xff]  ;;  %v37_v51 = vld [vmem:[%s3116_s0 + $0x28] sm:$0xff] }
   0x5   :  { %2458 = vmatpush3.bf16.msra.mxu1 %v2772_v8  ;;  %2455 = vmatpush3.bf16.msra.mxu0 %v2452_v5  ;;  %v36_v50 = vld [vmem:[%s3116_s0 + $0x20] sm:$0xff]  ;;  %v38_v52 = vld [vmem:[%s3116_s0 + $0x30] sm:$0xff]  ;;  %v39_v53 = vld [vmem:[%s3116_s0 + $0x38] sm:$0xff] }
   0x6   :  { %2459 = vmatprep.subr.bf16.mxu1 %v2699_v0  ;;  %2468 = vmatprep.subr.bf16.mxu0 %v2699_v0 }
   0x8   :  { %2234 = vmatmul.mubr.msk.f32.vlgmr.msra.gmra.mrb[0].mxu0 %vm49_vm0, %v33_v11 }
   0x9   :  { %2461 = vmatpush3.bf16.msra.mxu1 %v2785_v12  ;;  %2470 = vmatpush3.bf16.msra.mxu0 %v2772_v8 }
   0xa   :  { %2462 = vmatprep.subr.bf16.mxu1 %v2699_v0  ;;  %2471 = vmatprep.subr.bf16.mxu0 %v2699_v0 }
   0xb   :  { %2236 = vmatprep.mubr.msk.f32.mxu0 %vm49_vm0, %v34_v48 }
   0xc   :  { %2254 = vmatmul.mubr.f32.vlgmr.msra.gmra.mrb[0].mxu1 %v2701_v4  ;;  %2237 = vmatmul.mubr.msk.f32.gmra.mrb[2].mxu0 %vm49_vm0, %v35_v49 }
   0xd   :  { %2464 = vmatpush3.bf16.msra.mxu1 %v2772_v8  ;;  %2264 = vmatprep.mubr.msk.f32.mxu1 %vm2700_vm1, %v2701_v4 }
   0xe   :  { %2465 = vmatprep.subr.bf16.mxu1 %v2699_v0  ;;  %2473 = vmatpush3.bf16.msra.mxu0 %v2785_v12 }
   0xf   :  { %2480 = vmatprep.subr.bf16.mxu0 %v2699_v0  ;;  %2239 = vmatprep.mubr.msk.f32.mxu0 %vm49_vm0, %v36_v50 }
  0x10   :  { %2240 = vmatmul.mubr.msk.f32.gmra.mrb[4].mxu0 %vm49_vm0, %v37_v51 }
  0x11   :  { %2467 = vmatpush3.bf16.msra.mxu1 %v2785_v12  ;;  %2242 = vmatprep.mubr.msk.f32.mxu0 %vm49_vm0, %v38_v52 }
  0x12   :  { %2474 = vmatprep.subr.bf16.mxu1 %v2699_v0 }
  0x14   :  { %2243 = vmatmul.mubr.msk.f32.gmra.mrb[6].mxu0 %vm49_vm0, %v39_v53 }
  0x15   :  { %2275 = vmatprep.mubr.msk.f32.mxu0 %vm2700_vm1, %v2701_v4 }
  0xdb   :  { %v2235_v14 = vpop.f32.mrb[0].mxu0 }
  0xdc   :  { %v140_v15 = vpop.f32.mrb[1].mxu0  ;;  %v146_v34 = vadd.f32 %v2235_v14, %v2806_v13 }
  0xdd   :  { %v141_v16 = vadd.f32 %v2806_v13, %v140_v15 }
  0xdf   :  { %v262_v17 = vpop.f32.mrb[0].mxu1  ;;  %v2238_v57 = vpop.f32.mrb[2].mxu0 }
  0xe0   :  { %v266_v18 = vadd.f32 %v262_v17, %v141_v16  ;;  %v2255_v19 = vpop.f32.mrb[1].mxu1  ;;  %v150_v58 = vpop.f32.mrb[3].mxu0 }
  0xe1   :  { %v151_v1 = vadd.f32 %v2806_v13, %v150_v58 }
  0xe2   :  { %2571 = vtanh.f32 %v266_v18  ;;  %v2081_v21 = vmul.f32 -1.442695, %v266_v18 }
  0xe3   :  { %v2852_v59 = vpop.f32.mrb[4].mxu0 }
  0xe4   :  { %2573 = vpow2.f32 %v2081_v21  ;;  %v2854_v60 = vpop.f32.mrb[5].mxu0 }
  0xe7   :  { %v2856_v61 = vpop.f32.mrb[6].mxu0 }
  0xe8   :  { %v2858_v62 = vpop.f32.mrb[7].mxu0 }
  0xec   :  { %v2572_v20 = vpop.eup %2571 }
  0xed   :  { %276 = vrot.lane.b32.xlu0 %v2572_v20, %s2702_s25 }
  0xee   :  { %v2574_v22 = vpop.eup %2573 }
  0xef   :  { %v270_v23 = vadd.f32 1.0, %v2574_v22 }
  0xf1   :  { %2575 = vrcp.f32 %v270_v23  ;;  %v156_v23 = vadd.f32 %v2238_v57, %v2806_v13 }
  0xfb   :  { %v2576_v24 = vpop.eup %2575 }
  0xfc   :  { %v274_v27 = vmul.f32 0.0, %v2576_v24 }
 0x15f   :  { %v277_v25 = vpop.permute.xlu0 %276 }
 0x160   :  { %v279_v26 = vmul.f32 %v2576_v24, %v277_v25 }
 0x162   :  { %281 = vrot.lane.b32.xlu0 %v279_v26, %s2702_s25 }
 0x1d4   :  { %v282_v28 = vpop.permute.xlu0 %281 }
 0x1d5   :  { %v284_v29 = vadd.f32 %v282_v28, %v274_v27 }
 0x1d7   :  { %2577 = vtanh.f32 %v284_v29 }
 0x1e1   :  { %v2578_v30 = vpop.eup %2577 }
 0x1e2   :  { %287 = vrot.lane.b32.xlu1 %v2578_v30, %s2702_s25 }
 0x254   :  { %v288_v31 = vpop.permute.xlu1 %287 }
 0x255   :  { %v290_v32 = vmul.f32 %v2576_v24, %v288_v31 }
 0x257   :  { %292 = vrot.lane.b32.xlu1 %v290_v32, %s2703_s3 }
 0x2c9   :  { %v293_v33 = vpop.permute.xlu1 %292 }
 0x2ca   :  { %295 = vst.msk [vmem:[#allocation2] sm:$0xff] %vm192_vm2, %v293_v33  ;;  %2265 = vmatmul.mubr.msk.f32.vlgmr.msra.gmra.mrb[2].mxu1 %vm192_vm2, %v293_v33 }
 0x2cb   :  { %2476 = vmatpush3.bf16.msra.mxu1 %v2772_v8  ;;  %2286 = vmatprep.mubr.msk.f32.mxu1 %vm2700_vm1, %v2701_v4 }
 0x2cc   :  { %2477 = vmatprep.subr.bf16.mxu1 %v2699_v0 }
 0x2cf   :  { %2479 = vmatpush3.bf16.msra.mxu1 %v2785_v12 }
 0x2d0   :  { %2486 = vmatprep.subr.bf16.mxu1 %v2699_v0 }
 0x39d   :  { %v365_v35 = vpop.f32.mrb[2].mxu1 }
 0x39e   :  { %v369_v36 = vadd.f32 %v365_v35, %v146_v34  ;;  %v2266_v37 = vpop.f32.mrb[3].mxu1 }
 0x3a0   :  { %2579 = vtanh.f32 %v369_v36  ;;  %v2083_v39 = vmul.f32 -1.442695, %v369_v36 }
 0x3a2   :  { %2581 = vpow2.f32 %v2083_v39 }
 0x3aa   :  { %v2580_v38 = vpop.eup %2579 }
 0x3ab   :  { %379 = vrot.lane.b32.xlu0 %v2580_v38, %s2702_s25 }
 0x3ac   :  { %v2582_v40 = vpop.eup %2581 }
 0x3ad   :  { %v373_v41 = vadd.f32 1.0, %v2582_v40 }
 0x3af   :  { %2583 = vrcp.f32 %v373_v41  ;;  %v161_v41 = vadd.f32 %v2806_v13, %v2854_v60  ;;  %v166_v60 = vadd.f32 %v2852_v59, %v2806_v13 }
 0x3b9   :  { %v2584_v42 = vpop.eup %2583 }
 0x3ba   :  { %v377_v45 = vmul.f32 %v2584_v42, %v284_v29 }
 0x41d   :  { %v380_v43 = vpop.permute.xlu0 %379 }
 0x41e   :  { %v382_v44 = vmul.f32 %v2584_v42, %v380_v43 }
 0x420   :  { %384 = vrot.lane.b32.xlu1 %v382_v44, %s2702_s25 }
 0x492   :  { %v385_v46 = vpop.permute.xlu1 %384 }
 0x493   :  { %v387_v47 = vadd.f32 %v385_v46, %v377_v45 }
 0x495   :  { %2585 = vtanh.f32 %v387_v47 }
 0x49f   :  { %v2586_v54 = vpop.eup %2585 }
 0x4a0   :  { %390 = vrot.lane.b32.xlu0 %v2586_v54, %s2702_s25 }
 0x512   :  { %v391_v55 = vpop.permute.xlu0 %390 }
 0x513   :  { %v393_v56 = vmul.f32 %v2584_v42, %v391_v55 }
 0x515   :  { %395 = vrot.lane.b32.xlu1 %v393_v56, %s2703_s3 }
 0x587   :  { %v396_v63 = vpop.permute.xlu1 %395 }
 0x588   :  { %398 = vst.msk [vmem:[#allocation2 + $0x8] sm:$0xff] %vm192_vm2, %v396_v63  ;;  %2276 = vmatmul.mubr.msk.f32.vlgmr.msra.gmra.mrb[8].mxu0 %vm192_vm2, %v396_v63 }
 0x589   :  { %2482 = vmatpush3.bf16.msra.mxu0 %v2772_v8  ;;  %2297 = vmatprep.mubr.msk.f32.mxu0 %vm2700_vm1, %v2701_v4 }
 0x58a   :  { %2483 = vmatprep.subr.bf16.mxu0 %v2699_v0 }
 0x58d   :  { %2485 = vmatpush3.bf16.msra.mxu0 %v2785_v12 }
 0x58e   :  { %2492 = vmatprep.subr.bf16.mxu0 %v2699_v0 }
 0x65b   :  { %v468_v2 = vpop.f32.mrb[8].mxu0 }
 0x65c   :  { %v472_v3 = vadd.f32 %v468_v2, %v151_v1  ;;  %v2277_v5 = vpop.f32.mrb[9].mxu0 }
 0x65e   :  { %2587 = vtanh.f32 %v472_v3  ;;  %v2085_v7 = vmul.f32 -1.442695, %v472_v3 }
 0x660   :  { %2589 = vpow2.f32 %v2085_v7 }
 0x668   :  { %v2588_v6 = vpop.eup %2587 }
 0x669   :  { %482 = vrot.lane.b32.xlu0 %v2588_v6, %s2702_s25 }
 0x66a   :  { %v2590_v9 = vpop.eup %2589 }
 0x66b   :  { %v476_v10 = vadd.f32 1.0, %v2590_v9 }
 0x66d   :  { %2591 = vrcp.f32 %v476_v10 }
 0x677   :  { %v2592_v11 = vpop.eup %2591 }
 0x678   :  { %v480_v16 = vmul.f32 %v2592_v11, %v387_v47 }
 0x6db   :  { %v483_v14 = vpop.permute.xlu0 %482 }
 0x6dc   :  { %v485_v15 = vmul.f32 %v2592_v11, %v483_v14  ;;  %v1025_v14 = vld [vmem:[%s3118_s4] sm:$0xff] }
 0x6de   :  { %487 = vrot.lane.b32.xlu1 %v485_v15, %s2702_s25  ;;  %v1026_v15 = vld [vmem:[%s3118_s4 + $0x8] sm:$0xff] }
 0x750   :  { %v488_v17 = vpop.permute.xlu1 %487 }
 0x751   :  { %v490_v18 = vadd.f32 %v488_v17, %v480_v16  ;;  %v2504_v16 = vpack.c.bf16 %v1026_v15, %v1025_v14 }
 0x753   :  { %2593 = vtanh.f32 %v490_v18 }
 0x75d   :  { %v2594_v19 = vpop.eup %2593 }
 0x75e   :  { %493 = vrot.lane.b32.xlu0 %v2594_v19, %s2702_s25 }
 0x7d0   :  { %v494_v20 = vpop.permute.xlu0 %493 }
 0x7d1   :  { %v496_v21 = vmul.f32 %v2592_v11, %v494_v20  ;;  %v1027_v20 = vld [vmem:[%s3118_s4 + $0x10] sm:$0xff] }
 0x7d3   :  { %498 = vrot.lane.b32.xlu1 %v496_v21, %s2703_s3  ;;  %v1028_v21 = vld [vmem:[%s3118_s4 + $0x18] sm:$0xff] }
 0x845   :  { %v499_v22 = vpop.permute.xlu1 %498 }
 0x846   :  { %501 = vst.msk [vmem:[#allocation2 + $0x10] sm:$0xff] %vm192_vm2, %v499_v22  ;;  %2287 = vmatmul.mubr.msk.f32.vlgmr.msra.gmra.mrb[4].mxu1 %vm192_vm2, %v499_v22  ;;  %v2508_v22 = vpack.c.bf16 %v1028_v21, %v1027_v20 }
 0x847   :  { %2488 = vmatpush3.bf16.msra.mxu1 %v2772_v8  ;;  %2308 = vmatprep.mubr.msk.f32.mxu1 %vm2700_vm1, %v2701_v4 }
 0x848   :  { %2489 = vmatprep.subr.bf16.mxu1 %v2699_v0 }
 0x84b   :  { %2491 = vmatpush3.bf16.msra.mxu1 %v2785_v12 }
 0x84c   :  { %2498 = vmatprep.subr.bf16.mxu1 %v2699_v0 }
 0x919   :  { %v571_v24 = vpop.f32.mrb[4].mxu1 }
 0x91a   :  { %v575_v25 = vadd.f32 %v571_v24, %v156_v23  ;;  %v2288_v26 = vpop.f32.mrb[5].mxu1  ;;  %v1017_v24 = vld [vmem:[#allocation2] sm:$0xff] }
 0x91b   :  { %v1019_v26 = vld [vmem:[#allocation2 + $0x10] sm:$0xff] }
 0x91c   :  { %2595 = vtanh.f32 %v575_v25  ;;  %v2087_v28 = vmul.f32 -1.442695, %v575_v25  ;;  %v1018_v25 = vld [vmem:[#allocation2 + $0x8] sm:$0xff] }
 0x91e   :  { %2597 = vpow2.f32 %v2087_v28 }
 0x926   :  { %v2596_v27 = vpop.eup %2595 }
 0x927   :  { %585 = vrot.lane.b32.xlu0 %v2596_v27, %s2702_s25 }
 0x928   :  { %v2598_v29 = vpop.eup %2597 }
 0x929   :  { %v579_v30 = vadd.f32 1.0, %v2598_v29 }
 0x92b   :  { %2599 = vrcp.f32 %v579_v30  ;;  %v171_v30 = vadd.f32 %v2806_v13, %v2858_v62 }
 0x935   :  { %v2600_v31 = vpop.eup %2599 }
 0x936   :  { %v583_v34 = vmul.f32 %v2600_v31, %v490_v18 }
 0x999   :  { %v586_v32 = vpop.permute.xlu0 %585 }
 0x99a   :  { %v588_v33 = vmul.f32 %v2600_v31, %v586_v32 }
 0x99c   :  { %590 = vrot.lane.b32.xlu1 %v588_v33, %s2702_s25 }
 0xa0e   :  { %v591_v35 = vpop.permute.xlu1 %590 }
 0xa0f   :  { %v593_v36 = vadd.f32 %v591_v35, %v583_v34 }
 0xa11   :  { %2601 = vtanh.f32 %v593_v36 }
 0xa1b   :  { %v2602_v37 = vpop.eup %2601 }
 0xa1c   :  { %596 = vrot.lane.b32.xlu0 %v2602_v37, %s2702_s25 }
 0xa8e   :  { %v597_v38 = vpop.permute.xlu0 %596 }
 0xa8f   :  { %v599_v39 = vmul.f32 %v2600_v31, %v597_v38 }
 0xa91   :  { %601 = vrot.lane.b32.xlu1 %v599_v39, %s2703_s3 }
 0xb03   :  { %v602_v40 = vpop.permute.xlu1 %601 }
 0xb04   :  { %604 = vst.msk [vmem:[#allocation2 + $0x18] sm:$0xff] %vm192_vm2, %v602_v40  ;;  %2298 = vmatmul.mubr.msk.f32.vlgmr.msra.gmra.mrb[10].mxu0 %vm192_vm2, %v602_v40 }
 0xb05   :  { %2494 = vmatpush3.bf16.msra.mxu0 %v2772_v8  ;;  %2319 = vmatprep.mubr.msk.f32.mxu0 %vm2700_vm1, %v2701_v4 }
 0xb06   :  { %2495 = vmatprep.subr.bf16.mxu0 %v2699_v0 }
 0xb09   :  { %2497 = vmatpush3.bf16.msra.mxu0 %v2785_v12 }
 0xb0a   :  { %2505 = vmatprep.subr.bf16.mxu0 %v2504_v16 }
 0xb0b   :  { %v1020_v27 = vld [vmem:[#allocation2 + $0x18] sm:$0xff] }
 0xbd7   :  { %v674_v42 = vpop.f32.mrb[10].mxu0 }
 0xbd8   :  { %v678_v43 = vadd.f32 %v674_v42, %v161_v41  ;;  %v2299_v44 = vpop.f32.mrb[11].mxu0 }
 0xbda   :  { %2603 = vtanh.f32 %v678_v43  ;;  %v2089_v46 = vmul.f32 -1.442695, %v678_v43 }
 0xbdc   :  { %2605 = vpow2.f32 %v2089_v46 }
 0xbe4   :  { %v2604_v45 = vpop.eup %2603 }
 0xbe5   :  { %688 = vrot.lane.b32.xlu0 %v2604_v45, %s2702_s25 }
 0xbe6   :  { %v2606_v47 = vpop.eup %2605 }
 0xbe7   :  { %v682_v48 = vadd.f32 1.0, %v2606_v47 }
 0xbe9   :  { %2607 = vrcp.f32 %v682_v48 }
 0xbf3   :  { %v2608_v49 = vpop.eup %2607 }
 0xbf4   :  { %v686_v52 = vmul.f32 %v2608_v49, %v593_v36 }
 0xc57   :  { %v689_v50 = vpop.permute.xlu0 %688 }
 0xc58   :  { %v691_v51 = vmul.f32 %v2608_v49, %v689_v50  ;;  %v1173_v50 = vld [vmem:[%s3119_s5] sm:$0xff] }
 0xc5a   :  { %693 = vrot.lane.b32.xlu1 %v691_v51, %s2702_s25  ;;  %v1174_v51 = vld [vmem:[%s3119_s5 + $0x8] sm:$0xff] }
 0xccc   :  { %v694_v53 = vpop.permute.xlu1 %693 }
 0xccd   :  { %v696_v54 = vadd.f32 %v694_v53, %v686_v52  ;;  %v2958_v52 = vpack.c.bf16 %v1174_v51, %v1173_v50  ;;  %v1175_v53 = vld [vmem:[%s3119_s5 + $0x10] sm:$0xff] }
 0xccf   :  { %2609 = vtanh.f32 %v696_v54 }
 0xcd9   :  { %v2610_v55 = vpop.eup %2609 }
 0xcda   :  { %699 = vrot.lane.b32.xlu0 %v2610_v55, %s2702_s25 }
 0xd4c   :  { %v700_v56 = vpop.permute.xlu0 %699 }
 0xd4d   :  { %v702_v57 = vmul.f32 %v2608_v49, %v700_v56 }
 0xd4f   :  { %704 = vrot.lane.b32.xlu1 %v702_v57, %s2703_s3 }
 0xdc1   :  { %v705_v58 = vpop.permute.xlu1 %704 }
 0xdc2   :  { %707 = vst.msk [vmem:[#allocation2 + $0x20] sm:$0xff] %vm192_vm2, %v705_v58  ;;  %2309 = vmatmul.mubr.msk.f32.vlgmr.msra.gmra.mrb[6].mxu1 %vm192_vm2, %v705_v58 }
 0xdc3   :  { %2500 = vmatpush3.bf16.msra.mxu1 %v2772_v8  ;;  %2330 = vmatprep.mubr.msk.f32.mxu1 %vm2700_vm1, %v2701_v4 }
 0xdc4   :  { %2501 = vmatprep.subr.bf16.mxu1 %v2699_v0 }
 0xdc7   :  { %2503 = vmatpush3.bf16.msra.mxu1 %v2785_v12 }
 0xdc8   :  { %2512 = vmatprep.subr.bf16.mxu1 %v2699_v0 }
 0xdc9   :  { %v1021_v28 = vld [vmem:[#allocation2 + $0x20] sm:$0xff] }
 0xe95   :  { %v777_v63 = vpop.f32.mrb[6].mxu1 }
 0xe96   :  { %v781_v1 = vadd.f32 %v777_v63, %v166_v60  ;;  %v2310_v2 = vpop.f32.mrb[7].mxu1  ;;  %v176_v63 = vadd.f32 %v2856_v61, %v2806_v13 }
 0xe98   :  { %2611 = vtanh.f32 %v781_v1  ;;  %v2091_v8 = vmul.f32 -1.442695, %v781_v1 }
 0xe9a   :  { %2613 = vpow2.f32 %v2091_v8  ;;  %v2994_v8 = vld [vmem:[%s3120_s6] ss:$0 sm:$0xff] }
 0xea2   :  { %v2612_v3 = vpop.eup %2611 }
 0xea3   :  { %791 = vrot.lane.b32.xlu0 %v2612_v3, %s2702_s25 }
 0xea4   :  { %v2614_v5 = vpop.eup %2613 }
 0xea5   :  { %v785_v6 = vadd.f32 1.0, %v2614_v5 }
 0xea7   :  { %2615 = vrcp.f32 %v785_v6 }
 0xeb1   :  { %v2616_v7 = vpop.eup %2615 }
 0xeb2   :  { %v789_v10 = vmul.f32 %v2616_v7, %v696_v54  ;;  %v1176_v54 = vld [vmem:[%s3119_s5 + $0x18] sm:$0xff] }
 0xeb3   :  { %v2968_v55 = vpack.c.bf16 %v1176_v54, %v1175_v53 }
 0xf15   :  { %v792_v9 = vpop.permute.xlu0 %791 }
 0xf16   :  { %v794_v12 = vmul.f32 %v2616_v7, %v792_v9 }
 0xf18   :  { %796 = vrot.lane.b32.xlu1 %v794_v12, %s2702_s25 }
 0xf8a   :  { %v797_v11 = vpop.permute.xlu1 %796 }
 0xf8b   :  { %v799_v59 = vadd.f32 %v797_v11, %v789_v10 }
 0xf8d   :  { %2617 = vtanh.f32 %v799_v59 }
 0xf97   :  { %v2618_v17 = vpop.eup %2617 }
 0xf98   :  { %802 = vrot.lane.b32.xlu0 %v2618_v17, %s2702_s25 }
0x100a   :  { %v803_v18 = vpop.permute.xlu0 %802 }
0x100b   :  { %v805_v19 = vmul.f32 %v2616_v7, %v803_v18 }
0x100d   :  { %807 = vrot.lane.b32.xlu1 %v805_v19, %s2703_s3 }
0x107f   :  { %v808_v23 = vpop.permute.xlu1 %807 }
0x1080   :  { %810 = vst.msk [vmem:[#allocation2 + $0x28] sm:$0xff] %vm192_vm2, %v808_v23  ;;  %2320 = vmatmul.mubr.msk.f32.vlgmr.msra.gmra.mrb[12].mxu0 %vm192_vm2, %v808_v23 }
0x1081   :  { %2507 = vmatpush3.bf16.msra.mxu0 %v2504_v16  ;;  %2341 = vmatprep.mubr.msk.f32.mxu0 %vm192_vm2, %v1017_v24 }
0x1082   :  { %2509 = vmatprep.subr.bf16.mxu0 %v2508_v22 }
0x1085   :  { %2511 = vmatpush3.bf16.msra.mxu0 %v2508_v22 }
0x1086   :  { %2524 = vmatprep.subr.bf16.mxu0 %v2699_v0 }
0x1087   :  { %v1022_v29 = vld [vmem:[#allocation2 + $0x28] sm:$0xff] }
0x1088   :  { %2342 = vmatmul.mubr.msk.f32.vlgmr.msra.gmra.mrb[14].mxu0 %vm192_vm2, %v1018_v25 }
0x1089   :  { %2344 = vmatprep.mubr.msk.f32.mxu0 %vm192_vm2, %v1019_v26  ;;  %2526 = vmatpush3.bf16.msra.mxu0 %v2958_v52 }
0x108a   :  { %2527 = vmatprep.subr.bf16.mxu0 %v2699_v0 }
0x108c   :  { %2345 = vmatmul.mubr.msk.f32.gmra.mrb[16].mxu0 %vm192_vm2, %v1020_v27 }
0x108d   :  { %2347 = vmatprep.mubr.msk.f32.mxu0 %vm192_vm2, %v1021_v28  ;;  %2529 = vmatpush3.bf16.msra.mxu0 %v2968_v55 }
0x108e   :  { %2536 = vmatprep.subr.bf16.mxu0 %v2699_v0 }
0x1090   :  { %2348 = vmatmul.mubr.msk.f32.gmra.mrb[18].mxu0 %vm192_vm2, %v1022_v29 }
0x1153   :  { %v880_v31 = vpop.f32.mrb[12].mxu0 }
0x1154   :  { %v884_v32 = vadd.f32 %v880_v31, %v171_v30  ;;  %v2321_v33 = vpop.f32.mrb[13].mxu0 }
0x1156   :  { %2619 = vtanh.f32 %v884_v32  ;;  %v2093_v41 = vmul.f32 -1.442695, %v884_v32 }
0x1158   :  { %2621 = vpow2.f32 %v2093_v41 }
0x115b   :  { %v2936_v34 = vpop.f32.mrb[14].mxu0 }
0x115c   :  { %v1126_v35 = vpop.f32.mrb[15].mxu0 }
0x115d   :  { %v1127_v5 = vadd.f32 %v2994_v8, %v1126_v35 }
0x115f   :  { %v2938_v36 = vpop.f32.mrb[16].mxu0 }
0x1160   :  { %v2620_v37 = vpop.eup %2619  ;;  %v2940_v38 = vpop.f32.mrb[17].mxu0 }
0x1161   :  { %894 = vrot.lane.b32.xlu0 %v2620_v37, %s2702_s25  ;;  %v1132_v37 = vadd.f32 %v2936_v34, %v2994_v8 }
0x1162   :  { %v2622_v62 = vpop.eup %2621 }
0x1163   :  { %v2943_v39 = vpop.f32.mrb[18].mxu0  ;;  %v888_v42 = vadd.f32 1.0, %v2622_v62 }
0x1164   :  { %v2945_v40 = vpop.f32.mrb[19].mxu0 }
0x1165   :  { %2623 = vrcp.f32 %v888_v42 }
0x116f   :  { %v2624_v43 = vpop.eup %2623 }
0x1170   :  { %v892_v46 = vmul.f32 %v2624_v43, %v799_v59 }
0x11d3   :  { %v895_v44 = vpop.permute.xlu0 %894 }
0x11d4   :  { %v897_v45 = vmul.f32 %v2624_v43, %v895_v44 }
0x11d6   :  { %899 = vrot.lane.b32.xlu1 %v897_v45, %s2702_s25 }
0x1248   :  { %v900_v47 = vpop.permute.xlu1 %899 }
0x1249   :  { %v2948_v48 = vadd.f32 %v900_v47, %v892_v46 }
0x124b   :  { %2625 = vtanh.f32 %v2948_v48 }
0x1255   :  { %v2626_v49 = vpop.eup %2625 }
0x1256   :  { %905 = vrot.lane.b32.xlu0 %v2626_v49, %s2702_s25 }
0x12c8   :  { %v906_v56 = vpop.permute.xlu0 %905 }
0x12c9   :  { %v908_v57 = vmul.f32 %v2624_v43, %v906_v56 }
0x12cb   :  { %910 = vrot.lane.b32.xlu1 %v908_v57, %s2703_s3 }
0x133d   :  { %v911_v58 = vpop.permute.xlu1 %910 }
0x133e   :  { %913 = vst.msk [vmem:[#allocation2 + $0x30] sm:$0xff] %vm192_vm2, %v911_v58  ;;  %2331 = vmatmul.mubr.msk.f32.vlgmr.msra.gmra.mrb[8].mxu1 %vm192_vm2, %v911_v58 }
0x133f   :  { %2514 = vmatpush3.bf16.msra.mxu1 %v2958_v52  ;;  %2361 = vmatprep.mubr.msk.f32.mxu1 %vm2700_vm1, %v2701_v4 }
0x1340   :  { %2515 = vmatprep.subr.bf16.mxu1 %v2699_v0 }
0x1343   :  { %2517 = vmatpush3.bf16.msra.mxu1 %v2968_v55 }
0x1344   :  { %2518 = vmatprep.subr.bf16.mxu1 %v2699_v0 }
0x1345   :  { %v1023_v60 = vld [vmem:[#allocation2 + $0x30] sm:$0xff] }
0x1346   :  { %2362 = vmatmul.mubr.f32.vlgmr.msra.gmra.mrb[10].mxu1 %v2701_v4  ;;  %2350 = vmatprep.mubr.msk.f32.mxu0 %vm192_vm2, %v1023_v60 }
0x1347   :  { %2520 = vmatpush3.bf16.msra.mxu1 %v2958_v52  ;;  %2372 = vmatprep.mubr.msk.f32.mxu1 %vm2700_vm1, %v2701_v4 }
0x1348   :  { %2521 = vmatprep.subr.bf16.mxu1 %v2699_v0 }
0x134b   :  { %2523 = vmatpush3.bf16.msra.mxu1 %v2968_v55 }
0x134c   :  { %2530 = vmatprep.subr.bf16.mxu1 %v2699_v0 }
0x1411   :  { %v983_v1 = vpop.f32.mrb[8].mxu1 }
0x1412   :  { %v987_v2 = vadd.f32 %v983_v1, %v176_v63  ;;  %v2332_v3 = vpop.f32.mrb[9].mxu1 }
0x1414   :  { %v2095_v20 = vmul.f32 -1.442695, %v987_v2 }
0x1419   :  { %v1244_v6 = vpop.f32.mrb[10].mxu1 }
0x141a   :  { %v1248_v7 = vadd.f32 %v1244_v6, %v1127_v5  ;;  %v2363_v9 = vpop.f32.mrb[11].mxu1 }
0x141c   :  { %2627 = vtanh.f32 %v1248_v7  ;;  %v2105_v10 = vmul.f32 -1.442695, %v1248_v7 }
0x141e   :  { %2629 = vpow2.f32 %v2105_v10 }
0x1426   :  { %v2628_v12 = vpop.eup %2627 }
0x1427   :  { %1258 = vrot.lane.b32.xlu0 %v2628_v12, %s2702_s25 }
0x1428   :  { %v2630_v13 = vpop.eup %2629 }
0x1429   :  { %v1252_v61 = vadd.f32 1.0, %v2630_v13 }
0x142b   :  { %2631 = vrcp.f32 %v1252_v61 }
0x1435   :  { %v2632_v11 = vpop.eup %2631 }
0x1436   :  { %v1256_v15 = vmul.f32 0.0, %v2632_v11 }
0x1499   :  { %v1259_v59 = vpop.permute.xlu0 %1258 }
0x149a   :  { %v1261_v14 = vmul.f32 %v2632_v11, %v1259_v59 }
0x149c   :  { %1263 = vrot.lane.b32.xlu1 %v1261_v14, %s2702_s25 }
0x150e   :  { %v1264_v16 = vpop.permute.xlu1 %1263 }
0x150f   :  { %v1266_v17 = vadd.f32 %v1264_v16, %v1256_v15 }
0x1511   :  { %2633 = vtanh.f32 %v1266_v17 }
0x1512   :  { %2635 = vtanh.f32 %v987_v2  ;;  %v1137_v2 = vadd.f32 %v2994_v8, %v2940_v38 }
0x1513   :  { %2637 = vpow2.f32 %v2095_v20 }
0x151b   :  { %v2634_v18 = vpop.eup %2633 }
0x151c   :  { %1269 = vrot.lane.b32.xlu0 %v2634_v18, %s2702_s25  ;;  %v2636_v19 = vpop.eup %2635 }
0x151d   :  { %v2638_v21 = vpop.eup %2637 }
0x151e   :  { %v991_v22 = vadd.f32 1.0, %v2638_v21 }
0x1520   :  { %997 = vrot.lane.b32.xlu0 %v2636_v19, %s2702_s25  ;;  %2639 = vrcp.f32 %v991_v22  ;;  %v1142_v19 = vadd.f32 %v2938_v36, %v2994_v8 }
0x152a   :  { %v2640_v25 = vpop.eup %2639 }
0x152b   :  { %v995_v29 = vmul.f32 %v2640_v25, %v2948_v48 }
0x158e   :  { %v1270_v23 = vpop.permute.xlu0 %1269 }
0x158f   :  { %v1272_v24 = vmul.f32 %v2632_v11, %v1270_v23 }
0x1591   :  { %1275 = vrot.lane.b32.xlu1 %v1272_v24, %s2703_s3 }
0x1592   :  { %v998_v26 = vpop.permute.xlu0 %997 }
0x1593   :  { %v1000_v27 = vmul.f32 %v2640_v25, %v998_v26 }
0x1595   :  { %1002 = vrot.lane.b32.xlu0 %v1000_v27, %s2702_s25 }
0x1603   :  { %v1276_v28 = vpop.permute.xlu1 %1275 }
0x1604   :  { %2373 = vmatmul.mubr.msk.f32.vlgmr.msra.gmra.mrb[12].mxu1 %vm192_vm2, %v1276_v28 }
0x1605   :  { %2532 = vmatpush3.bf16.msra.mxu1 %v2958_v52  ;;  %2394 = vmatprep.mubr.msk.f32.mxu1 %vm2700_vm1, %v2701_v4 }
0x1606   :  { %2533 = vmatprep.subr.bf16.mxu1 %v2699_v0 }
0x1607   :  { %v1003_v30 = vpop.permute.xlu0 %1002 }
0x1608   :  { %v1005_v31 = vadd.f32 %v1003_v30, %v995_v29 }
0x1609   :  { %2535 = vmatpush3.bf16.msra.mxu1 %v2968_v55 }
0x160a   :  { %2641 = vtanh.f32 %v1005_v31  ;;  %2542 = vmatprep.subr.bf16.mxu1 %v2699_v0 }
0x1614   :  { %v2642_v32 = vpop.eup %2641 }
0x1615   :  { %1008 = vrot.lane.b32.xlu0 %v2642_v32, %s2702_s25 }
0x1687   :  { %v1009_v33 = vpop.permute.xlu0 %1008 }
0x1688   :  { %v1011_v35 = vmul.f32 %v2640_v25, %v1009_v33 }
0x168a   :  { %1013 = vrot.lane.b32.xlu0 %v1011_v35, %s2703_s3 }
0x16d7   :  { %v1345_v41 = vpop.f32.mrb[12].mxu1 }
0x16d8   :  { %v1349_v62 = vadd.f32 %v1345_v41, %v1132_v37  ;;  %v2374_v42 = vpop.f32.mrb[13].mxu1  ;;  %v1147_v41 = vadd.f32 %v2994_v8, %v2945_v40 }
0x16da   :  { %2643 = vtanh.f32 %v1349_v62  ;;  %v2107_v46 = vmul.f32 -1.442695, %v1349_v62 }
0x16dc   :  { %2645 = vpow2.f32 %v2107_v46 }
0x16e4   :  { %v2644_v43 = vpop.eup %2643 }
0x16e5   :  { %1359 = vrot.lane.b32.xlu1 %v2644_v43, %s2702_s25 }
0x16e6   :  { %v2646_v47 = vpop.eup %2645 }
0x16e7   :  { %v1353_v34 = vadd.f32 1.0, %v2646_v47 }
0x16e9   :  { %2647 = vrcp.f32 %v1353_v34 }
0x16f3   :  { %v2648_v48 = vpop.eup %2647 }
0x16f4   :  { %v1357_v51 = vmul.f32 %v2648_v48, %v1266_v17 }
0x16fc   :  { %v1014_v44 = vpop.permute.xlu0 %1013 }
0x16fd   :  { %1016 = vst.msk [vmem:[#allocation2 + $0x38] sm:$0xff] %vm192_vm2, %v1014_v44 }
0x1704   :  { %v1024_v45 = vld [vmem:[#allocation2 + $0x38] sm:$0xff] }
0x1705   :  { %2351 = vmatmul.mubr.msk.f32.gmra.mrb[20].mxu0 %vm192_vm2, %v1024_v45 }
0x1706   :  { %2383 = vmatprep.mubr.msk.f32.mxu0 %vm2700_vm1, %v2701_v4 }
0x1757   :  { %v1360_v49 = vpop.permute.xlu1 %1359 }
0x1758   :  { %v1362_v50 = vmul.f32 %v2648_v48, %v1360_v49 }
0x175a   :  { %1364 = vrot.lane.b32.xlu1 %v1362_v50, %s2702_s25 }
0x17cc   :  { %v1365_v53 = vpop.permute.xlu1 %1364 }
0x17cd   :  { %v1367_v54 = vadd.f32 %v1365_v53, %v1357_v51 }
0x17cf   :  { %2649 = vtanh.f32 %v1367_v54 }
0x17d8   :  { %v3021_v56 = vpop.f32.mrb[20].mxu0 }
0x17d9   :  { %v2650_v57 = vpop.eup %2649  ;;  %v3023_v58 = vpop.f32.mrb[21].mxu0 }
0x17da   :  { %1370 = vrot.lane.b32.xlu1 %v2650_v57, %s2702_s25 }
0x184c   :  { %v1371_v60 = vpop.permute.xlu1 %1370 }
0x184d   :  { %v1373_v63 = vmul.f32 %v2648_v48, %v1371_v60 }
0x184f   :  { %1376 = vrot.lane.b32.xlu1 %v1373_v63, %s2703_s3  ;;  %v1152_v63 = vadd.f32 %v2943_v39, %v2994_v8 }
0x18c1   :  { %v1377_v1 = vpop.permute.xlu1 %1376 }
0x18c2   :  { %2384 = vmatmul.mubr.msk.f32.vlgmr.msra.gmra.mrb[22].mxu0 %vm192_vm2, %v1377_v1 }
0x18c3   :  { %2538 = vmatpush3.bf16.msra.mxu0 %v2958_v52  ;;  %2405 = vmatprep.mubr.msk.f32.mxu0 %vm2700_vm1, %v2701_v4 }
0x18c4   :  { %2539 = vmatprep.subr.bf16.mxu0 %v2699_v0 }
0x18c7   :  { %2541 = vmatpush3.bf16.msra.mxu0 %v2968_v55 }
0x18c8   :  { %2548 = vmatprep.subr.bf16.mxu0 %v2699_v0 }
0x1995   :  { %v1446_v3 = vpop.f32.mrb[22].mxu0 }
0x1996   :  { %v1450_v5 = vadd.f32 %v1446_v3, %v1137_v2  ;;  %v2385_v6 = vpop.f32.mrb[23].mxu0 }
0x1998   :  { %2651 = vtanh.f32 %v1450_v5  ;;  %v2109_v9 = vmul.f32 -1.442695, %v1450_v5 }
0x199a   :  { %2653 = vpow2.f32 %v2109_v9 }
0x19a2   :  { %v2652_v7 = vpop.eup %2651 }
0x19a3   :  { %1460 = vrot.lane.b32.xlu0 %v2652_v7, %s2702_s25 }
0x19a4   :  { %v2654_v12 = vpop.eup %2653 }
0x19a5   :  { %v1454_v10 = vadd.f32 1.0, %v2654_v12 }
0x19a7   :  { %2655 = vrcp.f32 %v1454_v10 }
0x19b1   :  { %v2656_v13 = vpop.eup %2655 }
0x19b2   :  { %v1458_v59 = vmul.f32 %v2656_v13, %v1367_v54 }
0x1a15   :  { %v1461_v61 = vpop.permute.xlu0 %1460 }
0x1a16   :  { %v1463_v11 = vmul.f32 %v2656_v13, %v1461_v61 }
0x1a18   :  { %1465 = vrot.lane.b32.xlu1 %v1463_v11, %s2702_s25 }
0x1a8a   :  { %v1466_v14 = vpop.permute.xlu1 %1465 }
0x1a8b   :  { %v1468_v38 = vadd.f32 %v1466_v14, %v1458_v59 }
0x1a8d   :  { %2657 = vtanh.f32 %v1468_v38 }
0x1a97   :  { %v2658_v15 = vpop.eup %2657 }
0x1a98   :  { %1471 = vrot.lane.b32.xlu0 %v2658_v15, %s2702_s25 }
0x1b0a   :  { %v1472_v16 = vpop.permute.xlu0 %1471 }
0x1b0b   :  { %v1474_v17 = vmul.f32 %v2656_v13, %v1472_v16 }
0x1b0d   :  { %1477 = vrot.lane.b32.xlu1 %v1474_v17, %s2703_s3 }
0x1b7f   :  { %v1478_v18 = vpop.permute.xlu1 %1477 }
0x1b80   :  { %2395 = vmatmul.mubr.msk.f32.vlgmr.msra.gmra.mrb[14].mxu1 %vm192_vm2, %v1478_v18 }
0x1b81   :  { %2544 = vmatpush3.bf16.msra.mxu1 %v2958_v52  ;;  %2416 = vmatprep.mubr.msk.f32.mxu1 %vm2700_vm1, %v2701_v4 }
0x1b82   :  { %2545 = vmatprep.subr.bf16.mxu1 %v2699_v0 }
0x1b85   :  { %2547 = vmatpush3.bf16.msra.mxu1 %v2968_v55 }
0x1b86   :  { %2554 = vmatprep.subr.bf16.mxu1 %v2699_v0 }
0x1c53   :  { %v1547_v20 = vpop.f32.mrb[14].mxu1 }
0x1c54   :  { %v1551_v21 = vadd.f32 %v1547_v20, %v1142_v19  ;;  %v2396_v22 = vpop.f32.mrb[15].mxu1 }
0x1c56   :  { %2659 = vtanh.f32 %v1551_v21  ;;  %v2111_v24 = vmul.f32 -1.442695, %v1551_v21 }
0x1c58   :  { %2661 = vpow2.f32 %v2111_v24 }
0x1c60   :  { %v2660_v23 = vpop.eup %2659 }
0x1c61   :  { %1561 = vrot.lane.b32.xlu0 %v2660_v23, %s2702_s25 }
0x1c62   :  { %v2662_v25 = vpop.eup %2661 }
0x1c63   :  { %v1555_v26 = vadd.f32 1.0, %v2662_v25 }
0x1c65   :  { %2663 = vrcp.f32 %v1555_v26 }
0x1c6f   :  { %v2664_v27 = vpop.eup %2663 }
0x1c70   :  { %v1559_v30 = vmul.f32 %v2664_v27, %v1468_v38  ;;  %v1157_v38 = vadd.f32 %v2994_v8, %v3023_v58 }
0x1cd3   :  { %v1562_v28 = vpop.permute.xlu0 %1561 }
0x1cd4   :  { %v1564_v29 = vmul.f32 %v2664_v27, %v1562_v28 }
0x1cd6   :  { %1566 = vrot.lane.b32.xlu1 %v1564_v29, %s2702_s25 }
0x1d48   :  { %v1567_v31 = vpop.permute.xlu1 %1566 }
0x1d49   :  { %v1569_v36 = vadd.f32 %v1567_v31, %v1559_v30  ;;  %v1162_v30 = vadd.f32 %v3021_v56, %v2994_v8  ;;  %v1980_v56 = vld [vmem:[%s3121_s7] sm:$0xff] }
0x1d4b   :  { %2665 = vtanh.f32 %v1569_v36 }
0x1d55   :  { %v2666_v32 = vpop.eup %2665 }
0x1d56   :  { %1572 = vrot.lane.b32.xlu0 %v2666_v32, %s2702_s25 }
0x1dc8   :  { %v1573_v33 = vpop.permute.xlu0 %1572 }
0x1dc9   :  { %v1575_v35 = vmul.f32 %v2664_v27, %v1573_v33 }
0x1dcb   :  { %1578 = vrot.lane.b32.xlu1 %v1575_v35, %s2703_s3 }
0x1e3d   :  { %v1579_v37 = vpop.permute.xlu1 %1578 }
0x1e3e   :  { %2406 = vmatmul.mubr.msk.f32.vlgmr.msra.gmra.mrb[24].mxu0 %vm192_vm2, %v1579_v37 }
0x1e3f   :  { %2550 = vmatpush3.bf16.msra.mxu0 %v2958_v52  ;;  %2427 = vmatprep.mubr.msk.f32.mxu0 %vm2700_vm1, %v2701_v4 }
0x1e40   :  { %2551 = vmatprep.subr.bf16.mxu0 %v2699_v0 }
0x1e43   :  { %2553 = vmatpush3.bf16.msra.mxu0 %v2968_v55 }
0x1e44   :  { %2560 = vmatprep.subr.bf16.mxu0 %v2699_v0 }
0x1f11   :  { %v1648_v62 = vpop.f32.mrb[24].mxu0 }
0x1f12   :  { %v1652_v42 = vadd.f32 %v1648_v62, %v1147_v41  ;;  %v2407_v43 = vpop.f32.mrb[25].mxu0 }
0x1f14   :  { %2667 = vtanh.f32 %v1652_v42  ;;  %v2113_v45 = vmul.f32 -1.442695, %v1652_v42 }
0x1f16   :  { %2669 = vpow2.f32 %v2113_v45 }
0x1f1e   :  { %v2668_v44 = vpop.eup %2667 }
0x1f1f   :  { %1662 = vrot.lane.b32.xlu0 %v2668_v44, %s2702_s25 }
0x1f20   :  { %v2670_v46 = vpop.eup %2669 }
0x1f21   :  { %v1656_v47 = vadd.f32 1.0, %v2670_v46  ;;  %v1981_v46 = vld [vmem:[%s3121_s7 + $0x8] sm:$0xff] }
0x1f23   :  { %2671 = vrcp.f32 %v1656_v47  ;;  %v1982_v47 = vld [vmem:[%s3121_s7 + $0x10] sm:$0xff] }
0x1f2d   :  { %v2672_v34 = vpop.eup %2671 }
0x1f2e   :  { %v1660_v50 = vmul.f32 %v2672_v34, %v1569_v36 }
0x1f91   :  { %v1663_v48 = vpop.permute.xlu0 %1662 }
0x1f92   :  { %v1665_v49 = vmul.f32 %v2672_v34, %v1663_v48  ;;  %v1983_v48 = vld [vmem:[%s3121_s7 + $0x18] sm:$0xff] }
0x1f94   :  { %1667 = vrot.lane.b32.xlu1 %v1665_v49, %s2702_s25  ;;  %v2564_v49 = vpack.c.bf16 %v1983_v48, %v1982_v47 }
0x2006   :  { %v1668_v51 = vpop.permute.xlu1 %1667 }
0x2007   :  { %v1670_v40 = vadd.f32 %v1668_v51, %v1660_v50 }
0x2009   :  { %2673 = vtanh.f32 %v1670_v40 }
0x2013   :  { %v2674_v53 = vpop.eup %2673 }
0x2014   :  { %1673 = vrot.lane.b32.xlu0 %v2674_v53, %s2702_s25 }
0x2086   :  { %v1674_v54 = vpop.permute.xlu0 %1673 }
0x2087   :  { %v1676_v57 = vmul.f32 %v2672_v34, %v1674_v54  ;;  %v2561_v34 = vpack.c.bf16 %v1981_v46, %v1980_v56  ;;  %v2120_v54 = vld [vmem:[%s3122_s8] ss:$0 sm:$0xff] }
0x2089   :  { %1679 = vrot.lane.b32.xlu1 %v1676_v57, %s2703_s3 }
0x20fb   :  { %v1680_v60 = vpop.permute.xlu1 %1679 }
0x20fc   :  { %2417 = vmatmul.mubr.msk.f32.vlgmr.msra.gmra.mrb[16].mxu1 %vm192_vm2, %v1680_v60 }
0x20fd   :  { %2556 = vmatpush3.bf16.msra.mxu1 %v2958_v52  ;;  %2438 = vmatprep.mubr.msk.f32.mxu1 %vm2700_vm1, %v2701_v4 }
0x20fe   :  { %2557 = vmatprep.subr.bf16.mxu1 %v2699_v0 }
0x2101   :  { %2559 = vmatpush3.bf16.msra.mxu1 %v2968_v55 }
0x21cf   :  { %v1749_v1 = vpop.f32.mrb[16].mxu1 }
0x21d0   :  { %v1753_v2 = vadd.f32 %v1749_v1, %v1152_v63  ;;  %v2418_v3 = vpop.f32.mrb[17].mxu1 }
0x21d2   :  { %2675 = vtanh.f32 %v1753_v2  ;;  %v2115_v6 = vmul.f32 -1.442695, %v1753_v2 }
0x21d4   :  { %2677 = vpow2.f32 %v2115_v6 }
0x21dc   :  { %v2676_v5 = vpop.eup %2675 }
0x21dd   :  { %1763 = vrot.lane.b32.xlu0 %v2676_v5, %s2702_s25 }
0x21de   :  { %v2678_v52 = vpop.eup %2677 }
0x21df   :  { %v1757_v7 = vadd.f32 1.0, %v2678_v52 }
0x21e1   :  { %2679 = vrcp.f32 %v1757_v7 }
0x21eb   :  { %v2680_v9 = vpop.eup %2679 }
0x21ec   :  { %v1761_v55 = vmul.f32 %v2680_v9, %v1670_v40 }
0x224f   :  { %v1764_v12 = vpop.permute.xlu0 %1763 }
0x2250   :  { %v1766_v10 = vmul.f32 %v2680_v9, %v1764_v12 }
0x2252   :  { %1768 = vrot.lane.b32.xlu1 %v1766_v10, %s2702_s25 }
0x22c4   :  { %v1769_v13 = vpop.permute.xlu1 %1768 }
0x22c5   :  { %v1771_v39 = vadd.f32 %v1769_v13, %v1761_v55 }
0x22c7   :  { %2681 = vtanh.f32 %v1771_v39 }
0x22d1   :  { %v2682_v61 = vpop.eup %2681 }
0x22d2   :  { %1774 = vrot.lane.b32.xlu0 %v2682_v61, %s2702_s25 }
0x2344   :  { %v1775_v11 = vpop.permute.xlu0 %1774 }
0x2345   :  { %v1777_v59 = vmul.f32 %v2680_v9, %v1775_v11 }
0x2347   :  { %1780 = vrot.lane.b32.xlu1 %v1777_v59, %s2703_s3 }
0x23b9   :  { %v1781_v14 = vpop.permute.xlu1 %1780 }
0x23ba   :  { %2428 = vmatmul.mubr.msk.f32.vlgmr.msra.gmra.mrb[26].mxu0 %vm192_vm2, %v1781_v14 }
0x23bb   :  { %2449 = vmatprep.mubr.msk.f32.mxu0 %vm2700_vm1, %v2701_v4  ;;  %2562 = vmatpush3.bf16.msra.mxu0 %v2561_v34 }
0x23bc   :  { %2563 = vmatprep.subr.bf16.mxu0 %v2699_v0 }
0x23bf   :  { %2565 = vmatpush3.bf16.msra.mxu0 %v2564_v49 }
0x248d   :  { %v1850_v15 = vpop.f32.mrb[26].mxu0 }
0x248e   :  { %v1854_v16 = vadd.f32 %v1850_v15, %v1157_v38  ;;  %v2429_v17 = vpop.f32.mrb[27].mxu0 }
0x2490   :  { %2683 = vtanh.f32 %v1854_v16  ;;  %v2117_v19 = vmul.f32 -1.442695, %v1854_v16 }
0x2492   :  { %2685 = vpow2.f32 %v2117_v19 }
0x249a   :  { %v2684_v18 = vpop.eup %2683 }
0x249b   :  { %1864 = vrot.lane.b32.xlu0 %v2684_v18, %s2702_s25 }
0x249c   :  { %v2686_v20 = vpop.eup %2685 }
0x249d   :  { %v1858_v21 = vadd.f32 1.0, %v2686_v20 }
0x249f   :  { %2687 = vrcp.f32 %v1858_v21 }
0x24a9   :  { %v2688_v22 = vpop.eup %2687 }
0x24aa   :  { %v1862_v4 = vmul.f32 %v2688_v22, %v1771_v39 }
0x250d   :  { %v1865_v23 = vpop.permute.xlu0 %1864 }
0x250e   :  { %v1867_v24 = vmul.f32 %v2688_v22, %v1865_v23 }
0x2510   :  { %1869 = vrot.lane.b32.xlu1 %v1867_v24, %s2702_s25 }
0x2582   :  { %v1870_v25 = vpop.permute.xlu1 %1869 }
0x2583   :  { %v1872_v58 = vadd.f32 %v1870_v25, %v1862_v4 }
0x2585   :  { %2689 = vtanh.f32 %v1872_v58 }
0x258f   :  { %v2690_v26 = vpop.eup %2689 }
0x2590   :  { %1875 = vrot.lane.b32.xlu0 %v2690_v26, %s2702_s25 }
0x2602   :  { %v1876_v27 = vpop.permute.xlu0 %1875 }
0x2603   :  { %v1878_v28 = vmul.f32 %v2688_v22, %v1876_v27 }
0x2605   :  { %1881 = vrot.lane.b32.xlu1 %v1878_v28, %s2703_s3 }
0x2677   :  { %v1882_v29 = vpop.permute.xlu1 %1881 }
0x2678   :  { %2439 = vmatmul.mubr.msk.f32.vlgmr.msra.gmra.mrb[18].mxu1 %vm192_vm2, %v1882_v29 }
0x274b   :  { %v1951_v31 = vpop.f32.mrb[18].mxu1 }
0x274c   :  { %v1955_v36 = vadd.f32 %v1951_v31, %v1162_v30  ;;  %v2440_v32 = vpop.f32.mrb[19].mxu1 }
0x274e   :  { %2691 = vtanh.f32 %v1955_v36  ;;  %v2119_v35 = vmul.f32 -1.442695, %v1955_v36 }
0x2750   :  { %2693 = vpow2.f32 %v2119_v35 }
0x2758   :  { %v2692_v33 = vpop.eup %2691 }
0x2759   :  { %1965 = vrot.lane.b32.xlu0 %v2692_v33, %s2702_s25 }
0x275a   :  { %v2694_v37 = vpop.eup %2693 }
0x275b   :  { %v1959_v41 = vadd.f32 1.0, %v2694_v37 }
0x275d   :  { %2695 = vrcp.f32 %v1959_v41 }
0x2767   :  { %v2696_v62 = vpop.eup %2695 }
0x2768   :  { %v1963_v44 = vmul.f32 %v2696_v62, %v1872_v58 }
0x27cb   :  { %v1966_v42 = vpop.permute.xlu0 %1965 }
0x27cc   :  { %v1968_v43 = vmul.f32 %v2696_v62, %v1966_v42 }
0x27ce   :  { %1970 = vrot.lane.b32.xlu1 %v1968_v43, %s2702_s25 }
0x2840   :  { %v1971_v45 = vpop.permute.xlu1 %1970 }
0x2841   :  { %v1973_v8 = vadd.f32 %v1971_v45, %v1963_v44 }
0x2843   :  { %2697 = vtanh.f32 %v1973_v8 }
0x284d   :  { %v2698_v50 = vpop.eup %2697 }
0x284e   :  { %1976 = vrot.lane.b32.xlu0 %v2698_v50, %s2702_s25 }
0x28c0   :  { %v1977_v51 = vpop.permute.xlu0 %1976 }
0x28c1   :  { %v1979_v40 = vmul.f32 %v2696_v62, %v1977_v51 }
0x28c3   :  { %1992 = vrot.lane.b32.xlu1 %v1979_v40, %s2703_s3 }
0x2935   :  { %v1993_v53 = vpop.permute.xlu1 %1992 }
0x2936   :  { %2450 = vmatmul.mubr.msk.f32.vlgmr.msra.gmra.mrb[28].mxu0 %vm192_vm2, %v1993_v53 }
0x2a09   :  { %v2062_v57 = vpop.f32.mrb[28].mxu0 }
0x2a0a   :  { %v2063_v60 = vadd.f32 %v2120_v54, %v2062_v57  ;;  %v2451_v63 = vpop.f32.mrb[29].mxu0 }
0x2a0c   :  { %2067 = vst.msk [vmem:[%s3123_s9] sm:$0xff] %vm2066_vm3, %v2063_v60 }

</bundles_post_ra>
